<compile_context>
chip_gen: v7x
topology: tpu7x:2x2x1
jax: 0.10.0
libtpu: 0.0.40
codegen_flags: <defaults>
</compile_context>

<pallas_src>
import math

import jax
import jax.numpy as jnp
from jax.experimental import pallas as pl
from jax.experimental.pallas import tpu as pltpu

# module-consistent small sizes
S, B, D = 8, 2, 32          # seq, batch, d_model
H = 8                       # num_heads (fixed in the torch script)
HD = D // H                 # head dim
DFF = 256                   # dff (fixed in the torch script)
EPS = 1e-6                  # matches nn.LayerNorm(d_model, eps=1e-06)


def _layernorm(x, gamma, beta):
    mu = jnp.mean(x, axis=-1, keepdims=True)
    var = jnp.mean((x - mu) ** 2, axis=-1, keepdims=True)
    return (x - mu) * jax.lax.rsqrt(var + EPS) * gamma + beta


def encoder_layer_kernel(x_ref, wqkv_ref, bqkv_ref, wo_ref,
                         w1_ref, b1_ref, w2_ref, vecs_ref, o_ref):
    x = x_ref[...]                                               # (B*S, D)

    # packed small vectors: rows = [bo, b2, g1, be1, g2, be2]
    bo, b2 = vecs_ref[0:1, :], vecs_ref[1:2, :]
    g1, be1 = vecs_ref[2:3, :], vecs_ref[3:4, :]
    g2, be2 = vecs_ref[4:5, :], vecs_ref[5:6, :]

    # ---- fused QKV projection (single MXU push, 96-lane output) ----
    qkv = jnp.dot(x, wqkv_ref[...],
                  preferred_element_type=jnp.float32) + bqkv_ref[...]
    qkv = qkv.reshape(B, S, 3 * D)                               # split leading dim only
    q = qkv[:, :, 0 * D:1 * D]                                   # scale folded into Wq/bq
    k = qkv[:, :, 1 * D:2 * D]
    v = qkv[:, :, 2 * D:3 * D]

    # ---- multi-head attention: heads accumulated straight into Wo ----
    attn = jnp.zeros((B * S, D), jnp.float32)
    for h in range(H):                                           # static loop
        lo = h * HD
        qh = q[:, :, lo:lo + HD]                                 # (B, S, HD)
        kh = k[:, :, lo:lo + HD]
        vh = v[:, :, lo:lo + HD]
        s = jnp.einsum('bqd,bkd->bqk', qh, kh,
                       preferred_element_type=jnp.float32)       # (B, S, S)
        s = s - jnp.max(s, axis=-1, keepdims=True)
        p = jnp.exp(s)
        p = p * (1.0 / jnp.sum(p, axis=-1, keepdims=True))       # recip-mul, not divide
        ctx = jnp.einsum('bqk,bkd->bqd', p, vh,
                         preferred_element_type=jnp.float32)     # (B, S, HD)
        attn = attn + jnp.dot(ctx.reshape(B * S, HD),
                              wo_ref[lo:lo + HD, :],
                              preferred_element_type=jnp.float32)
    attn = attn + bo

    # dropout1/dropout2: identity (eval-mode)
    out1 = _layernorm(x + attn, g1, be1)

    # ---- feed-forward (256-lane h1 output) ----
    h1 = jnp.dot(out1, w1_ref[...],
                 preferred_element_type=jnp.float32) + b1_ref[...]
    h1 = jnp.maximum(h1, 0.0)
    ffn = jnp.dot(h1, w2_ref[...], preferred_element_type=jnp.float32) + b2

    o_ref[...] = _layernorm(out1 + ffn, g2, be2)


def transformer_encoder_layer(x_sbd, params):
    """x_sbd: (S, B, D) float32; params: 7 pre-packed 2-D arrays."""
    x = jnp.transpose(x_sbd, (1, 0, 2)).reshape(B * S, D)        # (B*S, D) slab
    vmem = pltpu.MemorySpace.VMEM
    out = pl.pallas_call(
        encoder_layer_kernel,
        out_shape=jax.ShapeDtypeStruct((B * S, D), jnp.float32),
        in_specs=[pl.BlockSpec(memory_space=vmem)] * (1 + len(params)),
        out_specs=pl.BlockSpec(memory_space=vmem),
    )(x, *params)
    return jnp.transpose(out.reshape(B, S, D), (1, 0, 2))        # (S, B, D)


def make_params(key):
    """Deterministic params, PyTorch shapes, returned pre-packed for the kernel."""
    ks = jax.random.split(key, 8)
    in_proj_w = 0.1 * jax.random.normal(ks[0], (3 * D, D), jnp.float32)
    in_proj_b = 0.1 * jax.random.normal(ks[1], (3 * D,), jnp.float32)
    out_proj_w = 0.1 * jax.random.normal(ks[2], (D, D), jnp.float32)
    out_proj_b = 0.1 * jax.random.normal(ks[3], (D,), jnp.float32)
    lin1_w = 0.1 * jax.random.normal(ks[4], (DFF, D), jnp.float32)
    lin1_b = 0.1 * jax.random.normal(ks[5], (DFF,), jnp.float32)
    lin2_w = 0.1 * jax.random.normal(ks[6], (D, DFF), jnp.float32)
    lin2_b = 0.1 * jax.random.normal(ks[7], (D,), jnp.float32)
    g1 = jnp.ones((D,), jnp.float32)
    be1 = jnp.zeros((D,), jnp.float32)
    g2 = jnp.ones((D,), jnp.float32)
    be2 = jnp.zeros((D,), jnp.float32)

    raw = dict(in_proj_w=in_proj_w, in_proj_b=in_proj_b,
               out_proj_w=out_proj_w, out_proj_b=out_proj_b,
               lin1_w=lin1_w, lin1_b=lin1_b, lin2_w=lin2_w, lin2_b=lin2_b,
               g1=g1, be1=be1, g2=g2, be2=be2)

    scale = 1.0 / math.sqrt(HD)
    wq, wk, wv = in_proj_w[0:D], in_proj_w[D:2 * D], in_proj_w[2 * D:3 * D]
    bq, bk, bv = in_proj_b[0:D], in_proj_b[D:2 * D], in_proj_b[2 * D:3 * D]

    # fused QKV, softmax scale folded into the q half
    wqkv = jnp.concatenate([wq.T * scale, wk.T, wv.T], axis=1)   # (D, 3D)
    bqkv = jnp.concatenate([bq * scale, bk, bv]).reshape(1, 3 * D)
    # packed small vectors: [bo, b2, g1, be1, g2, be2]
    vecs = jnp.stack([out_proj_b, lin2_b, g1, be1, g2, be2], axis=0)  # (6, D)

    kernel_params = (
        wqkv, bqkv,
        out_proj_w.T,                    # (D, D)
        lin1_w.T, lin1_b.reshape(1, DFF),  # (D, DFF), (1, DFF)
        lin2_w.T,                        # (DFF, D)
        vecs,                            # (6, D)
    )
    return raw, kernel_params


def reference(x_sbd, raw):
    """Pure-JAX mirror of PyTorch's forward (eval mode, no attn_mask)."""
    wq, wk, wv = (raw["in_proj_w"][0:D], raw["in_proj_w"][D:2 * D],
                  raw["in_proj_w"][2 * D:3 * D])
    bq, bk, bv = (raw["in_proj_b"][0:D], raw["in_proj_b"][D:2 * D],
                  raw["in_proj_b"][2 * D:3 * D])
    q = jnp.einsum("sbd,ed->sbe", x_sbd, wq) + bq
    k = jnp.einsum("sbd,ed->sbe", x_sbd, wk) + bk
    v = jnp.einsum("sbd,ed->sbe", x_sbd, wv) + bv
    scale = 1.0 / math.sqrt(HD)
    q = q.reshape(S, B * H, HD).transpose(1, 0, 2) * scale          # (B*H, S, HD)
    k = k.reshape(S, B * H, HD).transpose(1, 0, 2)
    v = v.reshape(S, B * H, HD).transpose(1, 0, 2)
    scores = jnp.einsum("hqd,hkd->hqk", q, k)
    attn = jax.nn.softmax(scores, axis=-1)
    o = jnp.einsum("hqk,hkd->hqd", attn, v)                         # (B*H, S, HD)
    o = o.transpose(1, 0, 2).reshape(S, B, D)
    o = jnp.einsum("sbd,ed->sbe", o, raw["out_proj_w"]) + raw["out_proj_b"]
    out1 = _layernorm(x_sbd + o, raw["g1"], raw["be1"])
    ffn = jnp.maximum(jnp.einsum("sbd,fd->sbf", out1, raw["lin1_w"])
                      + raw["lin1_b"], 0.0)
    ffn = jnp.einsum("sbf,df->sbd", ffn, raw["lin2_w"]) + raw["lin2_b"]
    return _layernorm(out1 + ffn, raw["g2"], raw["be2"])


if __name__ == "__main__":
    key = jax.random.PRNGKey(0)
    kx, kp = jax.random.split(key)
    x = jax.random.normal(kx, (S, B, D), jnp.float32)               # (seq, batch, d_model)
    raw, kernel_params = make_params(kp)

    out = transformer_encoder_layer(x, kernel_params)
    out = jax.block_until_ready(out)

    ref = reference(x, raw)
    assert out.shape == (S, B, D)
    assert jnp.allclose(out, ref, atol=1e-4, rtol=1e-4), "mismatch vs reference"
    print("KERNEL_OK")
</pallas_src>

<mosaic_0001>
module attributes {stable_mosaic.version = 11 : i64} {
  func.func @encoder_layer_kernel(%arg0: memref<16x32xf32, #tpu.memory_space<vmem>>, %arg1: memref<32x96xf32, #tpu.memory_space<vmem>>, %arg2: memref<1x96xf32, #tpu.memory_space<vmem>>, %arg3: memref<32x32xf32, #tpu.memory_space<vmem>>, %arg4: memref<32x256xf32, #tpu.memory_space<vmem>>, %arg5: memref<1x256xf32, #tpu.memory_space<vmem>>, %arg6: memref<256x32xf32, #tpu.memory_space<vmem>>, %arg7: memref<6x32xf32, #tpu.memory_space<vmem>>, %arg8: memref<16x32xf32, #tpu.memory_space<vmem>>) attributes {dimension_semantics = [], scalar_prefetch = 0 : i64, scratch_operands = 0 : i64, tpu.core_type = #tpu.core_type<tc>} {
    %c0 = arith.constant 0 : index
    %c0_0 = arith.constant 0 : index
    %0 = vector.load %arg0[%c0, %c0_0] : memref<16x32xf32, #tpu.memory_space<vmem>>, vector<16x32xf32>
    %c0_1 = arith.constant 0 : index
    %c0_2 = arith.constant 0 : index
    %1 = vector.load %arg7[%c0_1, %c0_2] : memref<6x32xf32, #tpu.memory_space<vmem>>, vector<1x32xf32>
    %c1 = arith.constant 1 : index
    %c0_3 = arith.constant 0 : index
    %2 = vector.load %arg7[%c1, %c0_3] : memref<6x32xf32, #tpu.memory_space<vmem>>, vector<1x32xf32>
    %c2 = arith.constant 2 : index
    %c0_4 = arith.constant 0 : index
    %3 = vector.load %arg7[%c2, %c0_4] : memref<6x32xf32, #tpu.memory_space<vmem>>, vector<1x32xf32>
    %c3 = arith.constant 3 : index
    %c0_5 = arith.constant 0 : index
    %4 = vector.load %arg7[%c3, %c0_5] : memref<6x32xf32, #tpu.memory_space<vmem>>, vector<1x32xf32>
    %c4 = arith.constant 4 : index
    %c0_6 = arith.constant 0 : index
    %5 = vector.load %arg7[%c4, %c0_6] : memref<6x32xf32, #tpu.memory_space<vmem>>, vector<1x32xf32>
    %c5 = arith.constant 5 : index
    %c0_7 = arith.constant 0 : index
    %6 = vector.load %arg7[%c5, %c0_7] : memref<6x32xf32, #tpu.memory_space<vmem>>, vector<1x32xf32>
    %c0_8 = arith.constant 0 : index
    %c0_9 = arith.constant 0 : index
    %7 = vector.load %arg1[%c0_8, %c0_9] : memref<32x96xf32, #tpu.memory_space<vmem>>, vector<32x96xf32>
    %cst = arith.constant dense<0.000000e+00> : vector<16x96xf32>
    %8 = tpu.matmul %0, %7, %cst {dimension_numbers = #tpu.dot_dimension_numbers<[1], [0], [0], [1], [0, 0, 1, 1], [], []>} : vector<16x32xf32>, vector<32x96xf32>, vector<16x96xf32> -> vector<16x96xf32>
    %c0_10 = arith.constant 0 : index
    %c0_11 = arith.constant 0 : index
    %9 = vector.load %arg2[%c0_10, %c0_11] : memref<1x96xf32, #tpu.memory_space<vmem>>, vector<1x96xf32>
    %10 = vector.broadcast %9 : vector<1x96xf32> to vector<16x96xf32>
    %11 = arith.addf %8, %10 : vector<16x96xf32>
    %12 = vector.shape_cast %11 : vector<16x96xf32> to vector<2x8x96xf32>
    %13 = vector.extract_strided_slice %12 {offsets = [0, 0, 0], sizes = [2, 8, 32], strides = [1, 1, 1]} : vector<2x8x96xf32> to vector<2x8x32xf32>
    %14 = vector.extract_strided_slice %12 {offsets = [0, 0, 32], sizes = [2, 8, 32], strides = [1, 1, 1]} : vector<2x8x96xf32> to vector<2x8x32xf32>
    %15 = vector.extract_strided_slice %12 {offsets = [0, 0, 64], sizes = [2, 8, 32], strides = [1, 1, 1]} : vector<2x8x96xf32> to vector<2x8x32xf32>
    %cst_12 = arith.constant 0.000000e+00 : f32
    %16 = vector.broadcast %cst_12 : f32 to vector<16x32xf32>
    %17 = vector.extract_strided_slice %13 {offsets = [0, 0, 0], sizes = [2, 8, 4], strides = [1, 1, 1]} : vector<2x8x32xf32> to vector<2x8x4xf32>
    %18 = vector.extract_strided_slice %14 {offsets = [0, 0, 0], sizes = [2, 8, 4], strides = [1, 1, 1]} : vector<2x8x32xf32> to vector<2x8x4xf32>
    %19 = vector.extract_strided_slice %15 {offsets = [0, 0, 0], sizes = [2, 8, 4], strides = [1, 1, 1]} : vector<2x8x32xf32> to vector<2x8x4xf32>
    "tpu.trace_start"() <{level = 10 : i32, message = "bqd,bkd->bqk"}> : () -> ()
    %cst_13 = arith.constant dense<0.000000e+00> : vector<2x8x8xf32>
    %20 = tpu.matmul %17, %18, %cst_13 {dimension_numbers = #tpu.dot_dimension_numbers<[2], [2], [1], [1], [0, 0, 0, 1, 1, 1], [0], [0]>} : vector<2x8x4xf32>, vector<2x8x4xf32>, vector<2x8x8xf32> -> vector<2x8x8xf32>
    "tpu.trace_stop"() : () -> ()
    %cst_14 = arith.constant dense<0xFF800000> : vector<2x8xf32>
    %21 = vector.multi_reduction <maximumf>, %20, %cst_14 [2] : vector<2x8x8xf32> to vector<2x8xf32>
    %22 = vector.shape_cast %21 : vector<2x8xf32> to vector<2x8x1xf32>
    %23 = vector.broadcast %22 : vector<2x8x1xf32> to vector<2x8x8xf32>
    %24 = arith.subf %20, %23 : vector<2x8x8xf32>
    %25 = math.exp %24 : vector<2x8x8xf32>
    %cst_15 = arith.constant dense<0.000000e+00> : vector<2x8xf32>
    %26 = vector.multi_reduction <add>, %25, %cst_15 [2] : vector<2x8x8xf32> to vector<2x8xf32>
    %27 = vector.shape_cast %26 : vector<2x8xf32> to vector<2x8x1xf32>
    %cst_16 = arith.constant 1.000000e+00 : f32
    %28 = vector.broadcast %cst_16 : f32 to vector<2x8x1xf32>
    %29 = arith.divf %28, %27 : vector<2x8x1xf32>
    %30 = vector.broadcast %29 : vector<2x8x1xf32> to vector<2x8x8xf32>
    %31 = arith.mulf %25, %30 : vector<2x8x8xf32>
    "tpu.trace_start"() <{level = 10 : i32, message = "bqk,bkd->bqd"}> : () -> ()
    %cst_17 = arith.constant dense<0.000000e+00> : vector<2x8x4xf32>
    %32 = tpu.matmul %31, %19, %cst_17 {dimension_numbers = #tpu.dot_dimension_numbers<[2], [1], [1], [2], [0, 0, 0, 1, 1, 2], [0], [0]>} : vector<2x8x8xf32>, vector<2x8x4xf32>, vector<2x8x4xf32> -> vector<2x8x4xf32>
    "tpu.trace_stop"() : () -> ()
    %33 = vector.shape_cast %32 : vector<2x8x4xf32> to vector<16x4xf32>
    %c0_18 = arith.constant 0 : index
    %c0_19 = arith.constant 0 : index
    %34 = vector.load %arg3[%c0_18, %c0_19] : memref<32x32xf32, #tpu.memory_space<vmem>>, vector<4x32xf32>
    %cst_20 = arith.constant dense<0.000000e+00> : vector<16x32xf32>
    %35 = tpu.matmul %33, %34, %cst_20 {dimension_numbers = #tpu.dot_dimension_numbers<[1], [0], [0], [1], [0, 0, 1, 1], [], []>} : vector<16x4xf32>, vector<4x32xf32>, vector<16x32xf32> -> vector<16x32xf32>
    %36 = arith.addf %16, %35 : vector<16x32xf32>
    %37 = vector.extract_strided_slice %13 {offsets = [0, 0, 4], sizes = [2, 8, 4], strides = [1, 1, 1]} : vector<2x8x32xf32> to vector<2x8x4xf32>
    %38 = vector.extract_strided_slice %14 {offsets = [0, 0, 4], sizes = [2, 8, 4], strides = [1, 1, 1]} : vector<2x8x32xf32> to vector<2x8x4xf32>
    %39 = vector.extract_strided_slice %15 {offsets = [0, 0, 4], sizes = [2, 8, 4], strides = [1, 1, 1]} : vector<2x8x32xf32> to vector<2x8x4xf32>
    "tpu.trace_start"() <{level = 10 : i32, message = "bqd,bkd->bqk"}> : () -> ()
    %cst_21 = arith.constant dense<0.000000e+00> : vector<2x8x8xf32>
    %40 = tpu.matmul %37, %38, %cst_21 {dimension_numbers = #tpu.dot_dimension_numbers<[2], [2], [1], [1], [0, 0, 0, 1, 1, 1], [0], [0]>} : vector<2x8x4xf32>, vector<2x8x4xf32>, vector<2x8x8xf32> -> vector<2x8x8xf32>
    "tpu.trace_stop"() : () -> ()
    %cst_22 = arith.constant dense<0xFF800000> : vector<2x8xf32>
    %41 = vector.multi_reduction <maximumf>, %40, %cst_22 [2] : vector<2x8x8xf32> to vector<2x8xf32>
    %42 = vector.shape_cast %41 : vector<2x8xf32> to vector<2x8x1xf32>
    %43 = vector.broadcast %42 : vector<2x8x1xf32> to vector<2x8x8xf32>
    %44 = arith.subf %40, %43 : vector<2x8x8xf32>
    %45 = math.exp %44 : vector<2x8x8xf32>
    %cst_23 = arith.constant dense<0.000000e+00> : vector<2x8xf32>
    %46 = vector.multi_reduction <add>, %45, %cst_23 [2] : vector<2x8x8xf32> to vector<2x8xf32>
    %47 = vector.shape_cast %46 : vector<2x8xf32> to vector<2x8x1xf32>
    %cst_24 = arith.constant 1.000000e+00 : f32
    %48 = vector.broadcast %cst_24 : f32 to vector<2x8x1xf32>
    %49 = arith.divf %48, %47 : vector<2x8x1xf32>
    %50 = vector.broadcast %49 : vector<2x8x1xf32> to vector<2x8x8xf32>
    %51 = arith.mulf %45, %50 : vector<2x8x8xf32>
    "tpu.trace_start"() <{level = 10 : i32, message = "bqk,bkd->bqd"}> : () -> ()
    %cst_25 = arith.constant dense<0.000000e+00> : vector<2x8x4xf32>
    %52 = tpu.matmul %51, %39, %cst_25 {dimension_numbers = #tpu.dot_dimension_numbers<[2], [1], [1], [2], [0, 0, 0, 1, 1, 2], [0], [0]>} : vector<2x8x8xf32>, vector<2x8x4xf32>, vector<2x8x4xf32> -> vector<2x8x4xf32>
    "tpu.trace_stop"() : () -> ()
    %53 = vector.shape_cast %52 : vector<2x8x4xf32> to vector<16x4xf32>
    %c4_26 = arith.constant 4 : index
    %c0_27 = arith.constant 0 : index
    %54 = vector.load %arg3[%c4_26, %c0_27] : memref<32x32xf32, #tpu.memory_space<vmem>>, vector<4x32xf32>
    %cst_28 = arith.constant dense<0.000000e+00> : vector<16x32xf32>
    %55 = tpu.matmul %53, %54, %cst_28 {dimension_numbers = #tpu.dot_dimension_numbers<[1], [0], [0], [1], [0, 0, 1, 1], [], []>} : vector<16x4xf32>, vector<4x32xf32>, vector<16x32xf32> -> vector<16x32xf32>
    %56 = arith.addf %36, %55 : vector<16x32xf32>
    %57 = vector.extract_strided_slice %13 {offsets = [0, 0, 8], sizes = [2, 8, 4], strides = [1, 1, 1]} : vector<2x8x32xf32> to vector<2x8x4xf32>
    %58 = vector.extract_strided_slice %14 {offsets = [0, 0, 8], sizes = [2, 8, 4], strides = [1, 1, 1]} : vector<2x8x32xf32> to vector<2x8x4xf32>
    %59 = vector.extract_strided_slice %15 {offsets = [0, 0, 8], sizes = [2, 8, 4], strides = [1, 1, 1]} : vector<2x8x32xf32> to vector<2x8x4xf32>
    "tpu.trace_start"() <{level = 10 : i32, message = "bqd,bkd->bqk"}> : () -> ()
    %cst_29 = arith.constant dense<0.000000e+00> : vector<2x8x8xf32>
    %60 = tpu.matmul %57, %58, %cst_29 {dimension_numbers = #tpu.dot_dimension_numbers<[2], [2], [1], [1], [0, 0, 0, 1, 1, 1], [0], [0]>} : vector<2x8x4xf32>, vector<2x8x4xf32>, vector<2x8x8xf32> -> vector<2x8x8xf32>
    "tpu.trace_stop"() : () -> ()
    %cst_30 = arith.constant dense<0xFF800000> : vector<2x8xf32>
    %61 = vector.multi_reduction <maximumf>, %60, %cst_30 [2] : vector<2x8x8xf32> to vector<2x8xf32>
    %62 = vector.shape_cast %61 : vector<2x8xf32> to vector<2x8x1xf32>
    %63 = vector.broadcast %62 : vector<2x8x1xf32> to vector<2x8x8xf32>
    %64 = arith.subf %60, %63 : vector<2x8x8xf32>
    %65 = math.exp %64 : vector<2x8x8xf32>
    %cst_31 = arith.constant dense<0.000000e+00> : vector<2x8xf32>
    %66 = vector.multi_reduction <add>, %65, %cst_31 [2] : vector<2x8x8xf32> to vector<2x8xf32>
    %67 = vector.shape_cast %66 : vector<2x8xf32> to vector<2x8x1xf32>
    %cst_32 = arith.constant 1.000000e+00 : f32
    %68 = vector.broadcast %cst_32 : f32 to vector<2x8x1xf32>
    %69 = arith.divf %68, %67 : vector<2x8x1xf32>
    %70 = vector.broadcast %69 : vector<2x8x1xf32> to vector<2x8x8xf32>
    %71 = arith.mulf %65, %70 : vector<2x8x8xf32>
    "tpu.trace_start"() <{level = 10 : i32, message = "bqk,bkd->bqd"}> : () -> ()
    %cst_33 = arith.constant dense<0.000000e+00> : vector<2x8x4xf32>
    %72 = tpu.matmul %71, %59, %cst_33 {dimension_numbers = #tpu.dot_dimension_numbers<[2], [1], [1], [2], [0, 0, 0, 1, 1, 2], [0], [0]>} : vector<2x8x8xf32>, vector<2x8x4xf32>, vector<2x8x4xf32> -> vector<2x8x4xf32>
    "tpu.trace_stop"() : () -> ()
    %73 = vector.shape_cast %72 : vector<2x8x4xf32> to vector<16x4xf32>
    %c8 = arith.constant 8 : index
    %c0_34 = arith.constant 0 : index
    %74 = vector.load %arg3[%c8, %c0_34] : memref<32x32xf32, #tpu.memory_space<vmem>>, vector<4x32xf32>
    %cst_35 = arith.constant dense<0.000000e+00> : vector<16x32xf32>
    %75 = tpu.matmul %73, %74, %cst_35 {dimension_numbers = #tpu.dot_dimension_numbers<[1], [0], [0], [1], [0, 0, 1, 1], [], []>} : vector<16x4xf32>, vector<4x32xf32>, vector<16x32xf32> -> vector<16x32xf32>
    %76 = arith.addf %56, %75 : vector<16x32xf32>
    %77 = vector.extract_strided_slice %13 {offsets = [0, 0, 12], sizes = [2, 8, 4], strides = [1, 1, 1]} : vector<2x8x32xf32> to vector<2x8x4xf32>
    %78 = vector.extract_strided_slice %14 {offsets = [0, 0, 12], sizes = [2, 8, 4], strides = [1, 1, 1]} : vector<2x8x32xf32> to vector<2x8x4xf32>
    %79 = vector.extract_strided_slice %15 {offsets = [0, 0, 12], sizes = [2, 8, 4], strides = [1, 1, 1]} : vector<2x8x32xf32> to vector<2x8x4xf32>
    "tpu.trace_start"() <{level = 10 : i32, message = "bqd,bkd->bqk"}> : () -> ()
    %cst_36 = arith.constant dense<0.000000e+00> : vector<2x8x8xf32>
    %80 = tpu.matmul %77, %78, %cst_36 {dimension_numbers = #tpu.dot_dimension_numbers<[2], [2], [1], [1], [0, 0, 0, 1, 1, 1], [0], [0]>} : vector<2x8x4xf32>, vector<2x8x4xf32>, vector<2x8x8xf32> -> vector<2x8x8xf32>
    "tpu.trace_stop"() : () -> ()
    %cst_37 = arith.constant dense<0xFF800000> : vector<2x8xf32>
    %81 = vector.multi_reduction <maximumf>, %80, %cst_37 [2] : vector<2x8x8xf32> to vector<2x8xf32>
    %82 = vector.shape_cast %81 : vector<2x8xf32> to vector<2x8x1xf32>
    %83 = vector.broadcast %82 : vector<2x8x1xf32> to vector<2x8x8xf32>
    %84 = arith.subf %80, %83 : vector<2x8x8xf32>
    %85 = math.exp %84 : vector<2x8x8xf32>
    %cst_38 = arith.constant dense<0.000000e+00> : vector<2x8xf32>
    %86 = vector.multi_reduction <add>, %85, %cst_38 [2] : vector<2x8x8xf32> to vector<2x8xf32>
    %87 = vector.shape_cast %86 : vector<2x8xf32> to vector<2x8x1xf32>
    %cst_39 = arith.constant 1.000000e+00 : f32
    %88 = vector.broadcast %cst_39 : f32 to vector<2x8x1xf32>
    %89 = arith.divf %88, %87 : vector<2x8x1xf32>
    %90 = vector.broadcast %89 : vector<2x8x1xf32> to vector<2x8x8xf32>
    %91 = arith.mulf %85, %90 : vector<2x8x8xf32>
    "tpu.trace_start"() <{level = 10 : i32, message = "bqk,bkd->bqd"}> : () -> ()
    %cst_40 = arith.constant dense<0.000000e+00> : vector<2x8x4xf32>
    %92 = tpu.matmul %91, %79, %cst_40 {dimension_numbers = #tpu.dot_dimension_numbers<[2], [1], [1], [2], [0, 0, 0, 1, 1, 2], [0], [0]>} : vector<2x8x8xf32>, vector<2x8x4xf32>, vector<2x8x4xf32> -> vector<2x8x4xf32>
    "tpu.trace_stop"() : () -> ()
    %93 = vector.shape_cast %92 : vector<2x8x4xf32> to vector<16x4xf32>
    %c12 = arith.constant 12 : index
    %c0_41 = arith.constant 0 : index
    %94 = vector.load %arg3[%c12, %c0_41] : memref<32x32xf32, #tpu.memory_space<vmem>>, vector<4x32xf32>
    %cst_42 = arith.constant dense<0.000000e+00> : vector<16x32xf32>
    %95 = tpu.matmul %93, %94, %cst_42 {dimension_numbers = #tpu.dot_dimension_numbers<[1], [0], [0], [1], [0, 0, 1, 1], [], []>} : vector<16x4xf32>, vector<4x32xf32>, vector<16x32xf32> -> vector<16x32xf32>
    %96 = arith.addf %76, %95 : vector<16x32xf32>
    %97 = vector.extract_strided_slice %13 {offsets = [0, 0, 16], sizes = [2, 8, 4], strides = [1, 1, 1]} : vector<2x8x32xf32> to vector<2x8x4xf32>
    %98 = vector.extract_strided_slice %14 {offsets = [0, 0, 16], sizes = [2, 8, 4], strides = [1, 1, 1]} : vector<2x8x32xf32> to vector<2x8x4xf32>
    %99 = vector.extract_strided_slice %15 {offsets = [0, 0, 16], sizes = [2, 8, 4], strides = [1, 1, 1]} : vector<2x8x32xf32> to vector<2x8x4xf32>
    "tpu.trace_start"() <{level = 10 : i32, message = "bqd,bkd->bqk"}> : () -> ()
    %cst_43 = arith.constant dense<0.000000e+00> : vector<2x8x8xf32>
    %100 = tpu.matmul %97, %98, %cst_43 {dimension_numbers = #tpu.dot_dimension_numbers<[2], [2], [1], [1], [0, 0, 0, 1, 1, 1], [0], [0]>} : vector<2x8x4xf32>, vector<2x8x4xf32>, vector<2x8x8xf32> -> vector<2x8x8xf32>
    "tpu.trace_stop"() : () -> ()
    %cst_44 = arith.constant dense<0xFF800000> : vector<2x8xf32>
    %101 = vector.multi_reduction <maximumf>, %100, %cst_44 [2] : vector<2x8x8xf32> to vector<2x8xf32>
    %102 = vector.shape_cast %101 : vector<2x8xf32> to vector<2x8x1xf32>
    %103 = vector.broadcast %102 : vector<2x8x1xf32> to vector<2x8x8xf32>
    %104 = arith.subf %100, %103 : vector<2x8x8xf32>
    %105 = math.exp %104 : vector<2x8x8xf32>
    %cst_45 = arith.constant dense<0.000000e+00> : vector<2x8xf32>
    %106 = vector.multi_reduction <add>, %105, %cst_45 [2] : vector<2x8x8xf32> to vector<2x8xf32>
    %107 = vector.shape_cast %106 : vector<2x8xf32> to vector<2x8x1xf32>
    %cst_46 = arith.constant 1.000000e+00 : f32
    %108 = vector.broadcast %cst_46 : f32 to vector<2x8x1xf32>
    %109 = arith.divf %108, %107 : vector<2x8x1xf32>
    %110 = vector.broadcast %109 : vector<2x8x1xf32> to vector<2x8x8xf32>
    %111 = arith.mulf %105, %110 : vector<2x8x8xf32>
    "tpu.trace_start"() <{level = 10 : i32, message = "bqk,bkd->bqd"}> : () -> ()
    %cst_47 = arith.constant dense<0.000000e+00> : vector<2x8x4xf32>
    %112 = tpu.matmul %111, %99, %cst_47 {dimension_numbers = #tpu.dot_dimension_numbers<[2], [1], [1], [2], [0, 0, 0, 1, 1, 2], [0], [0]>} : vector<2x8x8xf32>, vector<2x8x4xf32>, vector<2x8x4xf32> -> vector<2x8x4xf32>
    "tpu.trace_stop"() : () -> ()
    %113 = vector.shape_cast %112 : vector<2x8x4xf32> to vector<16x4xf32>
    %c16 = arith.constant 16 : index
    %c0_48 = arith.constant 0 : index
    %114 = vector.load %arg3[%c16, %c0_48] : memref<32x32xf32, #tpu.memory_space<vmem>>, vector<4x32xf32>
    %cst_49 = arith.constant dense<0.000000e+00> : vector<16x32xf32>
    %115 = tpu.matmul %113, %114, %cst_49 {dimension_numbers = #tpu.dot_dimension_numbers<[1], [0], [0], [1], [0, 0, 1, 1], [], []>} : vector<16x4xf32>, vector<4x32xf32>, vector<16x32xf32> -> vector<16x32xf32>
    %116 = arith.addf %96, %115 : vector<16x32xf32>
    %117 = vector.extract_strided_slice %13 {offsets = [0, 0, 20], sizes = [2, 8, 4], strides = [1, 1, 1]} : vector<2x8x32xf32> to vector<2x8x4xf32>
    %118 = vector.extract_strided_slice %14 {offsets = [0, 0, 20], sizes = [2, 8, 4], strides = [1, 1, 1]} : vector<2x8x32xf32> to vector<2x8x4xf32>
    %119 = vector.extract_strided_slice %15 {offsets = [0, 0, 20], sizes = [2, 8, 4], strides = [1, 1, 1]} : vector<2x8x32xf32> to vector<2x8x4xf32>
    "tpu.trace_start"() <{level = 10 : i32, message = "bqd,bkd->bqk"}> : () -> ()
    %cst_50 = arith.constant dense<0.000000e+00> : vector<2x8x8xf32>
    %120 = tpu.matmul %117, %118, %cst_50 {dimension_numbers = #tpu.dot_dimension_numbers<[2], [2], [1], [1], [0, 0, 0, 1, 1, 1], [0], [0]>} : vector<2x8x4xf32>, vector<2x8x4xf32>, vector<2x8x8xf32> -> vector<2x8x8xf32>
    "tpu.trace_stop"() : () -> ()
    %cst_51 = arith.constant dense<0xFF800000> : vector<2x8xf32>
    %121 = vector.multi_reduction <maximumf>, %120, %cst_51 [2] : vector<2x8x8xf32> to vector<2x8xf32>
    %122 = vector.shape_cast %121 : vector<2x8xf32> to vector<2x8x1xf32>
    %123 = vector.broadcast %122 : vector<2x8x1xf32> to vector<2x8x8xf32>
    %124 = arith.subf %120, %123 : vector<2x8x8xf32>
    %125 = math.exp %124 : vector<2x8x8xf32>
    %cst_52 = arith.constant dense<0.000000e+00> : vector<2x8xf32>
    %126 = vector.multi_reduction <add>, %125, %cst_52 [2] : vector<2x8x8xf32> to vector<2x8xf32>
    %127 = vector.shape_cast %126 : vector<2x8xf32> to vector<2x8x1xf32>
    %cst_53 = arith.constant 1.000000e+00 : f32
    %128 = vector.broadcast %cst_53 : f32 to vector<2x8x1xf32>
    %129 = arith.divf %128, %127 : vector<2x8x1xf32>
    %130 = vector.broadcast %129 : vector<2x8x1xf32> to vector<2x8x8xf32>
    %131 = arith.mulf %125, %130 : vector<2x8x8xf32>
    "tpu.trace_start"() <{level = 10 : i32, message = "bqk,bkd->bqd"}> : () -> ()
    %cst_54 = arith.constant dense<0.000000e+00> : vector<2x8x4xf32>
    %132 = tpu.matmul %131, %119, %cst_54 {dimension_numbers = #tpu.dot_dimension_numbers<[2], [1], [1], [2], [0, 0, 0, 1, 1, 2], [0], [0]>} : vector<2x8x8xf32>, vector<2x8x4xf32>, vector<2x8x4xf32> -> vector<2x8x4xf32>
    "tpu.trace_stop"() : () -> ()
    %133 = vector.shape_cast %132 : vector<2x8x4xf32> to vector<16x4xf32>
    %c20 = arith.constant 20 : index
    %c0_55 = arith.constant 0 : index
    %134 = vector.load %arg3[%c20, %c0_55] : memref<32x32xf32, #tpu.memory_space<vmem>>, vector<4x32xf32>
    %cst_56 = arith.constant dense<0.000000e+00> : vector<16x32xf32>
    %135 = tpu.matmul %133, %134, %cst_56 {dimension_numbers = #tpu.dot_dimension_numbers<[1], [0], [0], [1], [0, 0, 1, 1], [], []>} : vector<16x4xf32>, vector<4x32xf32>, vector<16x32xf32> -> vector<16x32xf32>
    %136 = arith.addf %116, %135 : vector<16x32xf32>
    %137 = vector.extract_strided_slice %13 {offsets = [0, 0, 24], sizes = [2, 8, 4], strides = [1, 1, 1]} : vector<2x8x32xf32> to vector<2x8x4xf32>
    %138 = vector.extract_strided_slice %14 {offsets = [0, 0, 24], sizes = [2, 8, 4], strides = [1, 1, 1]} : vector<2x8x32xf32> to vector<2x8x4xf32>
    %139 = vector.extract_strided_slice %15 {offsets = [0, 0, 24], sizes = [2, 8, 4], strides = [1, 1, 1]} : vector<2x8x32xf32> to vector<2x8x4xf32>
    "tpu.trace_start"() <{level = 10 : i32, message = "bqd,bkd->bqk"}> : () -> ()
    %cst_57 = arith.constant dense<0.000000e+00> : vector<2x8x8xf32>
    %140 = tpu.matmul %137, %138, %cst_57 {dimension_numbers = #tpu.dot_dimension_numbers<[2], [2], [1], [1], [0, 0, 0, 1, 1, 1], [0], [0]>} : vector<2x8x4xf32>, vector<2x8x4xf32>, vector<2x8x8xf32> -> vector<2x8x8xf32>
    "tpu.trace_stop"() : () -> ()
    %cst_58 = arith.constant dense<0xFF800000> : vector<2x8xf32>
    %141 = vector.multi_reduction <maximumf>, %140, %cst_58 [2] : vector<2x8x8xf32> to vector<2x8xf32>
    %142 = vector.shape_cast %141 : vector<2x8xf32> to vector<2x8x1xf32>
    %143 = vector.broadcast %142 : vector<2x8x1xf32> to vector<2x8x8xf32>
    %144 = arith.subf %140, %143 : vector<2x8x8xf32>
    %145 = math.exp %144 : vector<2x8x8xf32>
    %cst_59 = arith.constant dense<0.000000e+00> : vector<2x8xf32>
    %146 = vector.multi_reduction <add>, %145, %cst_59 [2] : vector<2x8x8xf32> to vector<2x8xf32>
    %147 = vector.shape_cast %146 : vector<2x8xf32> to vector<2x8x1xf32>
    %cst_60 = arith.constant 1.000000e+00 : f32
    %148 = vector.broadcast %cst_60 : f32 to vector<2x8x1xf32>
    %149 = arith.divf %148, %147 : vector<2x8x1xf32>
    %150 = vector.broadcast %149 : vector<2x8x1xf32> to vector<2x8x8xf32>
    %151 = arith.mulf %145, %150 : vector<2x8x8xf32>
    "tpu.trace_start"() <{level = 10 : i32, message = "bqk,bkd->bqd"}> : () -> ()
    %cst_61 = arith.constant dense<0.000000e+00> : vector<2x8x4xf32>
    %152 = tpu.matmul %151, %139, %cst_61 {dimension_numbers = #tpu.dot_dimension_numbers<[2], [1], [1], [2], [0, 0, 0, 1, 1, 2], [0], [0]>} : vector<2x8x8xf32>, vector<2x8x4xf32>, vector<2x8x4xf32> -> vector<2x8x4xf32>
    "tpu.trace_stop"() : () -> ()
    %153 = vector.shape_cast %152 : vector<2x8x4xf32> to vector<16x4xf32>
    %c24 = arith.constant 24 : index
    %c0_62 = arith.constant 0 : index
    %154 = vector.load %arg3[%c24, %c0_62] : memref<32x32xf32, #tpu.memory_space<vmem>>, vector<4x32xf32>
    %cst_63 = arith.constant dense<0.000000e+00> : vector<16x32xf32>
    %155 = tpu.matmul %153, %154, %cst_63 {dimension_numbers = #tpu.dot_dimension_numbers<[1], [0], [0], [1], [0, 0, 1, 1], [], []>} : vector<16x4xf32>, vector<4x32xf32>, vector<16x32xf32> -> vector<16x32xf32>
    %156 = arith.addf %136, %155 : vector<16x32xf32>
    %157 = vector.extract_strided_slice %13 {offsets = [0, 0, 28], sizes = [2, 8, 4], strides = [1, 1, 1]} : vector<2x8x32xf32> to vector<2x8x4xf32>
    %158 = vector.extract_strided_slice %14 {offsets = [0, 0, 28], sizes = [2, 8, 4], strides = [1, 1, 1]} : vector<2x8x32xf32> to vector<2x8x4xf32>
    %159 = vector.extract_strided_slice %15 {offsets = [0, 0, 28], sizes = [2, 8, 4], strides = [1, 1, 1]} : vector<2x8x32xf32> to vector<2x8x4xf32>
    "tpu.trace_start"() <{level = 10 : i32, message = "bqd,bkd->bqk"}> : () -> ()
    %cst_64 = arith.constant dense<0.000000e+00> : vector<2x8x8xf32>
    %160 = tpu.matmul %157, %158, %cst_64 {dimension_numbers = #tpu.dot_dimension_numbers<[2], [2], [1], [1], [0, 0, 0, 1, 1, 1], [0], [0]>} : vector<2x8x4xf32>, vector<2x8x4xf32>, vector<2x8x8xf32> -> vector<2x8x8xf32>
    "tpu.trace_stop"() : () -> ()
    %cst_65 = arith.constant dense<0xFF800000> : vector<2x8xf32>
    %161 = vector.multi_reduction <maximumf>, %160, %cst_65 [2] : vector<2x8x8xf32> to vector<2x8xf32>
    %162 = vector.shape_cast %161 : vector<2x8xf32> to vector<2x8x1xf32>
    %163 = vector.broadcast %162 : vector<2x8x1xf32> to vector<2x8x8xf32>
    %164 = arith.subf %160, %163 : vector<2x8x8xf32>
    %165 = math.exp %164 : vector<2x8x8xf32>
    %cst_66 = arith.constant dense<0.000000e+00> : vector<2x8xf32>
    %166 = vector.multi_reduction <add>, %165, %cst_66 [2] : vector<2x8x8xf32> to vector<2x8xf32>
    %167 = vector.shape_cast %166 : vector<2x8xf32> to vector<2x8x1xf32>
    %cst_67 = arith.constant 1.000000e+00 : f32
    %168 = vector.broadcast %cst_67 : f32 to vector<2x8x1xf32>
    %169 = arith.divf %168, %167 : vector<2x8x1xf32>
    %170 = vector.broadcast %169 : vector<2x8x1xf32> to vector<2x8x8xf32>
    %171 = arith.mulf %165, %170 : vector<2x8x8xf32>
    "tpu.trace_start"() <{level = 10 : i32, message = "bqk,bkd->bqd"}> : () -> ()
    %cst_68 = arith.constant dense<0.000000e+00> : vector<2x8x4xf32>
    %172 = tpu.matmul %171, %159, %cst_68 {dimension_numbers = #tpu.dot_dimension_numbers<[2], [1], [1], [2], [0, 0, 0, 1, 1, 2], [0], [0]>} : vector<2x8x8xf32>, vector<2x8x4xf32>, vector<2x8x4xf32> -> vector<2x8x4xf32>
    "tpu.trace_stop"() : () -> ()
    %173 = vector.shape_cast %172 : vector<2x8x4xf32> to vector<16x4xf32>
    %c28 = arith.constant 28 : index
    %c0_69 = arith.constant 0 : index
    %174 = vector.load %arg3[%c28, %c0_69] : memref<32x32xf32, #tpu.memory_space<vmem>>, vector<4x32xf32>
    %cst_70 = arith.constant dense<0.000000e+00> : vector<16x32xf32>
    %175 = tpu.matmul %173, %174, %cst_70 {dimension_numbers = #tpu.dot_dimension_numbers<[1], [0], [0], [1], [0, 0, 1, 1], [], []>} : vector<16x4xf32>, vector<4x32xf32>, vector<16x32xf32> -> vector<16x32xf32>
    %176 = arith.addf %156, %175 : vector<16x32xf32>
    %177 = vector.broadcast %1 : vector<1x32xf32> to vector<16x32xf32>
    %178 = arith.addf %176, %177 : vector<16x32xf32>
    %179 = arith.addf %0, %178 : vector<16x32xf32>
    %cst_71 = arith.constant dense<0.000000e+00> : vector<16xf32>
    %180 = vector.multi_reduction <add>, %179, %cst_71 [1] : vector<16x32xf32> to vector<16xf32>
    %181 = vector.shape_cast %180 : vector<16xf32> to vector<16x1xf32>
    %cst_72 = arith.constant 3.200000e+01 : f32
    %182 = vector.broadcast %cst_72 : f32 to vector<16x1xf32>
    %183 = arith.divf %181, %182 : vector<16x1xf32>
    %184 = vector.broadcast %183 : vector<16x1xf32> to vector<16x32xf32>
    %185 = arith.subf %179, %184 : vector<16x32xf32>
    %186 = arith.mulf %185, %185 : vector<16x32xf32>
    %cst_73 = arith.constant dense<0.000000e+00> : vector<16xf32>
    %187 = vector.multi_reduction <add>, %186, %cst_73 [1] : vector<16x32xf32> to vector<16xf32>
    %188 = vector.shape_cast %187 : vector<16xf32> to vector<16x1xf32>
    %cst_74 = arith.constant 3.200000e+01 : f32
    %189 = vector.broadcast %cst_74 : f32 to vector<16x1xf32>
    %190 = arith.divf %188, %189 : vector<16x1xf32>
    %191 = vector.broadcast %183 : vector<16x1xf32> to vector<16x32xf32>
    %192 = arith.subf %179, %191 : vector<16x32xf32>
    %cst_75 = arith.constant 9.99999997E-7 : f32
    %193 = vector.broadcast %cst_75 : f32 to vector<16x1xf32>
    %194 = arith.addf %190, %193 : vector<16x1xf32>
    %195 = math.rsqrt %194 : vector<16x1xf32>
    %196 = vector.broadcast %195 : vector<16x1xf32> to vector<16x32xf32>
    %197 = arith.mulf %192, %196 : vector<16x32xf32>
    %198 = vector.broadcast %3 : vector<1x32xf32> to vector<16x32xf32>
    %199 = arith.mulf %197, %198 : vector<16x32xf32>
    %200 = vector.broadcast %4 : vector<1x32xf32> to vector<16x32xf32>
    %201 = arith.addf %199, %200 : vector<16x32xf32>
    %c0_76 = arith.constant 0 : index
    %c0_77 = arith.constant 0 : index
    %202 = vector.load %arg4[%c0_76, %c0_77] : memref<32x256xf32, #tpu.memory_space<vmem>>, vector<32x256xf32>
    %cst_78 = arith.constant dense<0.000000e+00> : vector<16x256xf32>
    %203 = tpu.matmul %201, %202, %cst_78 {dimension_numbers = #tpu.dot_dimension_numbers<[1], [0], [0], [1], [0, 0, 1, 1], [], []>} : vector<16x32xf32>, vector<32x256xf32>, vector<16x256xf32> -> vector<16x256xf32>
    %c0_79 = arith.constant 0 : index
    %c0_80 = arith.constant 0 : index
    %204 = vector.load %arg5[%c0_79, %c0_80] : memref<1x256xf32, #tpu.memory_space<vmem>>, vector<1x256xf32>
    %205 = vector.broadcast %204 : vector<1x256xf32> to vector<16x256xf32>
    %206 = arith.addf %203, %205 : vector<16x256xf32>
    %cst_81 = arith.constant 0.000000e+00 : f32
    %207 = vector.broadcast %cst_81 : f32 to vector<16x256xf32>
    %208 = arith.maximumf %206, %207 : vector<16x256xf32>
    %c0_82 = arith.constant 0 : index
    %c0_83 = arith.constant 0 : index
    %209 = vector.load %arg6[%c0_82, %c0_83] : memref<256x32xf32, #tpu.memory_space<vmem>>, vector<256x32xf32>
    %cst_84 = arith.constant dense<0.000000e+00> : vector<16x32xf32>
    %210 = tpu.matmul %208, %209, %cst_84 {dimension_numbers = #tpu.dot_dimension_numbers<[1], [0], [0], [1], [0, 0, 1, 1], [], []>} : vector<16x256xf32>, vector<256x32xf32>, vector<16x32xf32> -> vector<16x32xf32>
    %211 = vector.broadcast %2 : vector<1x32xf32> to vector<16x32xf32>
    %212 = arith.addf %210, %211 : vector<16x32xf32>
    %213 = arith.addf %201, %212 : vector<16x32xf32>
    %cst_85 = arith.constant dense<0.000000e+00> : vector<16xf32>
    %214 = vector.multi_reduction <add>, %213, %cst_85 [1] : vector<16x32xf32> to vector<16xf32>
    %215 = vector.shape_cast %214 : vector<16xf32> to vector<16x1xf32>
    %cst_86 = arith.constant 3.200000e+01 : f32
    %216 = vector.broadcast %cst_86 : f32 to vector<16x1xf32>
    %217 = arith.divf %215, %216 : vector<16x1xf32>
    %218 = vector.broadcast %217 : vector<16x1xf32> to vector<16x32xf32>
    %219 = arith.subf %213, %218 : vector<16x32xf32>
    %220 = arith.mulf %219, %219 : vector<16x32xf32>
    %cst_87 = arith.constant dense<0.000000e+00> : vector<16xf32>
    %221 = vector.multi_reduction <add>, %220, %cst_87 [1] : vector<16x32xf32> to vector<16xf32>
    %222 = vector.shape_cast %221 : vector<16xf32> to vector<16x1xf32>
    %cst_88 = arith.constant 3.200000e+01 : f32
    %223 = vector.broadcast %cst_88 : f32 to vector<16x1xf32>
    %224 = arith.divf %222, %223 : vector<16x1xf32>
    %225 = vector.broadcast %217 : vector<16x1xf32> to vector<16x32xf32>
    %226 = arith.subf %213, %225 : vector<16x32xf32>
    %cst_89 = arith.constant 9.99999997E-7 : f32
    %227 = vector.broadcast %cst_89 : f32 to vector<16x1xf32>
    %228 = arith.addf %224, %227 : vector<16x1xf32>
    %229 = math.rsqrt %228 : vector<16x1xf32>
    %230 = vector.broadcast %229 : vector<16x1xf32> to vector<16x32xf32>
    %231 = arith.mulf %226, %230 : vector<16x32xf32>
    %232 = vector.broadcast %5 : vector<1x32xf32> to vector<16x32xf32>
    %233 = arith.mulf %231, %232 : vector<16x32xf32>
    %234 = vector.broadcast %6 : vector<1x32xf32> to vector<16x32xf32>
    %235 = arith.addf %233, %234 : vector<16x32xf32>
    %c0_90 = arith.constant 0 : index
    %c0_91 = arith.constant 0 : index
    %236 = vector.load %arg8[%c0_90, %c0_91] : memref<16x32xf32, #tpu.memory_space<vmem>>, vector<16x32xf32>
    tpu.vector_store %arg8[%c0_90, %c0_91], %235 {strides = array<i32>} : memref<16x32xf32, #tpu.memory_space<vmem>>, vector<16x32xf32>,
    return
  }
}

</mosaic_0001>

<bundles_post_ra>
// kernel: tpu_custom_call.1
= control target key start
LH: loop header
LB: loop body
LE: loop exit
PB: predicated region body
PF: predicated region fallthrough
CT: control target
= control target key end

     0   :  { %vm49_vm0 = vcmask 261120   ;;  %s5006_s0 = inlined_call_operand.vmem [shape: f32[16,32], index: 0, kind: input, shape index: {}]   ;;  %s5007_s1 = inlined_call_operand.vmem [shape: f32[32,96], index: 1, kind: input, shape index: {}]   ;;  %s5008_s2 = inlined_call_operand.vmem [shape: f32[1,96], index: 2, kind: input, shape index: {}]   ;;  %s5009_s3 = inlined_call_operand.vmem [shape: f32[32,32], index: 3, kind: input, shape index: {}]   ;;  %s5010_s4 = inlined_call_operand.vmem [shape: f32[32,256], index: 4, kind: input, shape index: {}]   ;;  %s5011_s5 = inlined_call_operand.vmem [shape: f32[1,256], index: 5, kind: input, shape index: {}]   ;;  %s5012_s6 = inlined_call_operand.vmem [shape: f32[256,32], index: 6, kind: input, shape index: {}]   ;;  %s5013_s7 = inlined_call_operand.vmem [shape: f32[6,32], index: 7, kind: input, shape index: {}]   ;;  %s5014_s8 = inlined_call_operand.hbm [shape: f32[16,32], index: 8, kind: output, shape index: {}]  }
   0x1   :  { %v38_v0 = vld [vmem:[%s5007_s1] sm:$0xff]  ;;  %v39_v1 = vld [vmem:[%s5007_s1 + $0x8] sm:$0xff]  ;;  %v40_v2 = vld [vmem:[%s5007_s1 + $0x10] sm:$0xff] }
   0x2   :  { %v4229_v3 = vpack.c.bf16 %v39_v1, %v38_v0  ;;  %v41_v4 = vld [vmem:[%s5007_s1 + $0x18] sm:$0xff]  ;;  %v30_v5 = vld [vmem:[%s5006_s0] sm:$0xff] }
   0x3   :  { %v4233_v6 = vpack.c.bf16 %v41_v4, %v40_v2  ;;  %4026 = vmatprep.mubr.msk.f32.mxu1 %vm49_vm0, %v30_v5 }
   0x4   :  { %13 = vsyncpa [#allocation3], 0  ;;  %4230 = vmatprep.subr.bf16.mxu1 %v4229_v3  ;;  %v31_v7 = vld [vmem:[%s5006_s0 + $0x8] sm:$0xff]  ;;  %v4417_v8 = vmov 0.0   ;;  %vm4418_vm1 = vmmov 0   ;;  %s4419_s18 = smov 96  }
   0x5   :  { %4232 = vmatpush3.bf16.msra.mxu1 %v4229_v3  ;;  %4059 = vmatprep.subr.mxu0 %v4417_v8  ;;  %v3803_v9 = vld [vmem:[%s5008_s2] ss:$0 sm:$0xff]  ;;  %vm134_vm2 = vcmask 31744   ;;  %vm286_vm3 = vcmask 64512   ;;  %s4420_s2 = smov 64   ;;  %s4421_s19 = smov 92  }
   0x6   :  { %4234 = vmatprep.subr.bf16.mxu1 %v4233_v6  ;;  %4061 = vmatprep.mubr.msk.f32.mxu0 %vm4418_vm1, %v4417_v8  ;;  %s4422_s20 = smov 124   ;;  %s4423_s21 = smov 60   ;;  %vm803_vm4 = vcmask 1043456  }
   0x7   :  { %s4424_s22 = smov 120   ;;  %s4425_s23 = smov 88  }
   0x8   :  { %s4426_s24 = smov 56   ;;  %s4427_s25 = smov 84  }
   0x9   :  { %4236 = vmatpush3.bf16.msra.mxu1 %v4233_v6  ;;  %s4428_s26 = smov 116   ;;  %s4429_s9 = smov 80  }
   0xa   :  { %4029 = vmatprep.subr.mxu1 %v4417_v8  ;;  %s4430_s12 = smov 52   ;;  %s4431_s13 = smov 112  }
   0xb   :  { %s4432_s14 = smov 48   ;;  %s4433_s15 = smov 76  }
   0xc   :  { %4027 = vmatmul.mubr.msk.f32.vlgmr.msra.gmra.mrb[0].mxu1 %vm49_vm0, %v31_v7  ;;  %s4434_s16 = smov 108   ;;  %s4441_s29 = smov 36  }
   0xd   :  { %4031 = vmatprep.mubr.msk.f32.mxu1 %vm4418_vm1, %v4417_v8 }
  0xdf   :  { %v4028_v10 = vpop.f32.mrb[0].mxu1 }
  0xe0   :  { %v122_v11 = vpop.f32.mrb[1].mxu1  ;;  %v4522_v13 = vadd.f32 %v4028_v10, %v3803_v9 }
  0xe1   :  { %v4519_v12 = vadd.f32 %v3803_v9, %v122_v11 }
  0xe3   :  { %132 = vrot.lane.b32.xlu0 %v4519_v12, %s4419_s18 }
  0xe7   :  { %210 = vrot.lane.b32.xlu0 %v4522_v13, %s4419_s18  ;;  %s4435_s18 = smov 72  }
 0x155   :  { %v133_v14 = vpop.permute.xlu0 %132 }
 0x156   :  { %4030 = vmatpush3.xpose.msk.msra.mxu1 %vm134_vm2, %v133_v14 }
 0x157   :  { %4034 = vmatprep.subr.mxu1 %v4417_v8 }
 0x159   :  { %4032 = vmatmul.mubr.msk.f32.vlgmr.msra.gmra.mrb[2].mxu1 %vm134_vm2, %v4519_v12  ;;  %v211_v15 = vpop.permute.xlu0 %210 }
 0x15a   :  { %4035 = vmatpush3.xpose.msk.msra.mxu1 %vm134_vm2, %v211_v15  ;;  %4036 = vmatprep.mubr.msk.f32.mxu1 %vm4418_vm1, %v4417_v8 }
 0x15b   :  { %4039 = vmatprep.subr.mxu1 %v4417_v8 }
 0x15d   :  { %4037 = vmatmul.mubr.msk.f32.vlgmr.msra.gmra.mrb[4].mxu1 %vm134_vm2, %v4522_v13 }
 0x15e   :  { %4041 = vmatprep.mubr.msk.f32.mxu1 %vm4418_vm1, %v4417_v8 }
 0x22c   :  { %v205_v16 = vpop.f32.mrb[2].mxu1 }
 0x22d   :  { %v4033_v17 = vpop.f32.mrb[3].mxu1  ;;  %v287_v18 = vsel %vm286_vm3, %v205_v16, -inf }
 0x22e   :  { %288 = vmax.xlane.f32.xlu1 %v287_v18  ;;  %v463_v17 = vld [vmem:[%s5009_s3] sm:$0xf] }
 0x230   :  { %v282_v19 = vpop.f32.mrb[4].mxu1 }
 0x231   :  { %v4038_v20 = vpop.f32.mrb[5].mxu1  ;;  %v290_v21 = vsel %vm286_vm3, %v282_v19, -inf }
 0x232   :  { %291 = vmax.xlane.f32.xlu1 %v290_v21 }
 0x243   :  { %311 = vrot.lane.b32.xlu1 %v4519_v12, %s4420_s2 }
 0x247   :  { %387 = vrot.lane.b32.xlu1 %v4522_v13, %s4420_s2 }
 0x24b   :  { %466 = vrot.lane.b32.xlu1 %v4519_v12, %s4421_s19 }
 0x24f   :  { %464 = vrot.lane.b32.xlu1 %v4519_v12, %s4422_s20 }
 0x2bb   :  { %v289_v22 = vpop.xlane.xlu1 %288 }
 0x2bc   :  { %v293_v23 = vsub.f32 %v205_v16, %v289_v22  ;;  %v796_v16 = vld [vmem:[%s5009_s3 + $0x4] sm:$0xf] }
 0x2be   :  { %v295_v24 = vmul.f32 1.442695, %v293_v23 }
 0x2bf   :  { %v292_v25 = vpop.xlane.xlu1 %291 }
 0x2c0   :  { %4319 = vpow2.f32 %v295_v24  ;;  %v294_v26 = vsub.f32 %v282_v19, %v292_v25 }
 0x2c2   :  { %v297_v27 = vmul.f32 1.442695, %v294_v26 }
 0x2c3   :  { %v312_v28 = vpop.permute.xlu1 %311 }
 0x2c4   :  { %4321 = vpow2.f32 %v297_v27  ;;  %4040 = vmatpush3.msra.mxu1 %v312_v28 }
 0x2c5   :  { %4044 = vmatprep.subr.mxu1 %v4417_v8 }
 0x2c7   :  { %v388_v33 = vpop.permute.xlu1 %387 }
 0x2ca   :  { %v4320_v29 = vpop.eup %4319 }
 0x2cb   :  { %v299_v30 = vsel %vm286_vm3, %v4320_v29, 0.0  ;;  %v467_v34 = vpop.permute.xlu1 %466 }
 0x2cc   :  { %300 = vadd.xlane.f32.xlu0 %v299_v30 }
 0x2ce   :  { %v4322_v31 = vpop.eup %4321 }
 0x2cf   :  { %v302_v32 = vsel %vm286_vm3, %v4322_v31, 0.0  ;;  %v465_v35 = vpop.permute.xlu1 %464 }
 0x2d0   :  { %303 = vadd.xlane.f32.xlu1 %v302_v32 }
 0x2e1   :  { %542 = vrot.lane.b32.xlu1 %v4522_v13, %s4422_s20  ;;  %s4436_s20 = smov 44  }
 0x2e2   :  { %544 = vrot.lane.b32.xlu0 %v4522_v13, %s4421_s19 }
 0x359   :  { %v301_v36 = vpop.xlane.xlu0 %300 }
 0x35a   :  { %4323 = vrcp.f32 %v301_v36 }
 0x35d   :  { %v304_v37 = vpop.xlane.xlu1 %303  ;;  %v545_v42 = vpop.permute.xlu0 %544 }
 0x35e   :  { %4325 = vrcp.f32 %v304_v37 }
 0x361   :  { %v543_v43 = vpop.permute.xlu1 %542 }
 0x364   :  { %v4324_v38 = vpop.eup %4323 }
 0x365   :  { %v309_v39 = vmul.f32 %v4324_v38, %v4320_v29 }
 0x367   :  { %4042 = vmatmul.mubr.msk.f32.vlgmr.msra.gmra.mrb[6].mxu1 %vm286_vm3, %v309_v39 }
 0x368   :  { %v4326_v40 = vpop.eup %4325  ;;  %4045 = vmatpush3.msra.mxu1 %v388_v33  ;;  %4046 = vmatprep.mubr.msk.f32.mxu1 %vm4418_vm1, %v4417_v8 }
 0x369   :  { %v310_v41 = vmul.f32 %v4326_v40, %v4322_v31  ;;  %4049 = vmatprep.subr.mxu1 %v4417_v8  ;;  %v1298_v40 = vld [vmem:[%s5009_s3 + $0x8] sm:$0xf] }
 0x36b   :  { %4047 = vmatmul.mubr.msk.f32.vlgmr.msra.gmra.mrb[8].mxu1 %vm286_vm3, %v310_v41 }
 0x36c   :  { %4051 = vmatprep.mubr.msk.f32.mxu1 %vm4418_vm1, %v4417_v8 }
 0x36f   :  { %4050 = vmatpush3.xpose.msk.msra.mxu1 %vm134_vm2, %v467_v34 }
 0x370   :  { %4054 = vmatprep.subr.mxu1 %v4417_v8 }
 0x372   :  { %4052 = vmatmul.mubr.msk.f32.vlgmr.msra.gmra.mrb[10].mxu1 %vm134_vm2, %v465_v35 }
 0x373   :  { %4055 = vmatpush3.xpose.msk.msra.mxu1 %vm134_vm2, %v545_v42  ;;  %4056 = vmatprep.mubr.msk.f32.mxu1 %vm4418_vm1, %v4417_v8 }
 0x374   :  { %4064 = vmatprep.subr.mxu1 %v4417_v8 }
 0x376   :  { %4057 = vmatmul.mubr.msk.f32.vlgmr.msra.gmra.mrb[12].mxu1 %vm134_vm2, %v543_v43 }
 0x377   :  { %4066 = vmatprep.mubr.msk.f32.mxu1 %vm4418_vm1, %v4417_v8 }
 0x43a   :  { %v4565_v44 = vpop.f32.mrb[6].mxu1 }
 0x43b   :  { %v4043_v45 = vpop.f32.mrb[7].mxu1 }
 0x43e   :  { %v4567_v46 = vpop.f32.mrb[8].mxu1 }
 0x43f   :  { %v4048_v47 = vpop.f32.mrb[9].mxu1 }
 0x445   :  { %v538_v48 = vpop.f32.mrb[10].mxu1 }
 0x446   :  { %v4053_v49 = vpop.f32.mrb[11].mxu1  ;;  %v620_v53 = vsel %vm286_vm3, %v538_v48, -inf }
 0x449   :  { %v616_v50 = vpop.f32.mrb[12].mxu1 }
 0x44a   :  { %v4058_v51 = vpop.f32.mrb[13].mxu1  ;;  %v623_v52 = vsel %vm286_vm3, %v616_v50, -inf }
 0x44b   :  { %624 = vmax.xlane.f32.xlu1 %v623_v52 }
 0x45c   :  { %720 = vrot.lane.b32.xlu1 %v4522_v13, %s4423_s21 }
 0x460   :  { %966 = vrot.lane.b32.xlu1 %v4519_v12, %s4424_s22 }
 0x464   :  { %1046 = vrot.lane.b32.xlu1 %v4522_v13, %s4425_s23 }
 0x468   :  { %1044 = vrot.lane.b32.xlu1 %v4522_v13, %s4424_s22  ;;  %s4438_s22 = smov 40  }
 0x48c   :  { %621 = vmax.xlane.f32.xlu1 %v620_v53 }
 0x4d8   :  { %v625_v54 = vpop.xlane.xlu1 %624 }
 0x4d9   :  { %v627_v55 = vsub.f32 %v616_v50, %v625_v54 }
 0x4db   :  { %v630_v56 = vmul.f32 1.442695, %v627_v55 }
 0x4dc   :  { %v721_v57 = vpop.permute.xlu1 %720 }
 0x4dd   :  { %4327 = vpow2.f32 %v630_v56  ;;  %4065 = vmatpush3.msra.mxu1 %v721_v57 }
 0x4de   :  { %4079 = vmatprep.subr.mxu1 %v4417_v8 }
 0x4e0   :  { %v967_v60 = vpop.permute.xlu1 %966 }
 0x4e4   :  { %v1047_v61 = vpop.permute.xlu1 %1046 }
 0x4e7   :  { %v4328_v58 = vpop.eup %4327 }
 0x4e8   :  { %v635_v59 = vsel %vm286_vm3, %v4328_v58, 0.0  ;;  %v1045_v62 = vpop.permute.xlu1 %1044 }
 0x4e9   :  { %636 = vadd.xlane.f32.xlu0 %v635_v59 }
 0x4ff   :  { %968 = vrot.lane.b32.xlu0 %v4519_v12, %s4425_s23  ;;  %s4439_s23 = smov 68  }
 0x519   :  { %v622_v63 = vpop.xlane.xlu1 %621 }
 0x51a   :  { %v626_v0 = vsub.f32 %v538_v48, %v622_v63 }
 0x51c   :  { %v628_v1 = vmul.f32 1.442695, %v626_v0 }
 0x51e   :  { %4329 = vpow2.f32 %v628_v1 }
 0x528   :  { %v4330_v2 = vpop.eup %4329 }
 0x529   :  { %v632_v3 = vsel %vm286_vm3, %v4330_v2, 0.0 }
 0x52a   :  { %633 = vadd.xlane.f32.xlu0 %v632_v3 }
 0x540   :  { %644 = vrot.lane.b32.xlu0 %v4519_v12, %s4423_s21  ;;  %s4437_s21 = smov 104  }
 0x544   :  { %1222 = vrot.lane.b32.xlu0 %v4522_v13, %s4426_s24 }
 0x548   :  { %1387 = vrot.lane.b32.xlu0 %v4519_v12, %s4427_s25 }
 0x54c   :  { %1385 = vrot.lane.b32.xlu0 %v4519_v12, %s4428_s26 }
 0x550   :  { %1465 = vrot.lane.b32.xlu0 %v4522_v13, %s4427_s25 }
 0x576   :  { %v637_v4 = vpop.xlane.xlu0 %636 }
 0x577   :  { %4331 = vrcp.f32 %v637_v4 }
 0x57a   :  { %v969_v7 = vpop.permute.xlu0 %968 }
 0x581   :  { %v4332_v5 = vpop.eup %4331 }
 0x582   :  { %v643_v6 = vmul.f32 %v4332_v5, %v4328_v58 }
 0x584   :  { %4067 = vmatmul.mubr.msk.f32.vlgmr.msra.gmra.mrb[14].mxu1 %vm286_vm3, %v643_v6 }
 0x585   :  { %4080 = vmatpush3.xpose.msk.msra.mxu1 %vm134_vm2, %v969_v7  ;;  %4081 = vmatprep.mubr.msk.f32.mxu1 %vm4418_vm1, %v4417_v8 }
 0x586   :  { %4084 = vmatprep.subr.mxu1 %v4417_v8 }
 0x588   :  { %4082 = vmatmul.mubr.msk.f32.vlgmr.msra.gmra.mrb[16].mxu1 %vm134_vm2, %v967_v60 }
 0x589   :  { %4085 = vmatpush3.xpose.msk.msra.mxu1 %vm134_vm2, %v1047_v61  ;;  %4086 = vmatprep.mubr.msk.f32.mxu1 %vm4418_vm1, %v4417_v8 }
 0x58a   :  { %4094 = vmatprep.subr.mxu1 %v4417_v8 }
 0x58c   :  { %4087 = vmatmul.mubr.msk.f32.vlgmr.msra.gmra.mrb[18].mxu1 %vm134_vm2, %v1045_v62 }
 0x58d   :  { %4096 = vmatprep.mubr.msk.f32.mxu1 %vm4418_vm1, %v4417_v8 }
 0x5b7   :  { %v634_v9 = vpop.xlane.xlu0 %633 }
 0x5b8   :  { %4333 = vrcp.f32 %v634_v9 }
 0x5bb   :  { %v645_v10 = vpop.permute.xlu0 %644 }
 0x5bc   :  { %4060 = vmatpush3.msra.mxu0 %v645_v10 }
 0x5bd   :  { %4069 = vmatprep.subr.msk.mxu0 %vm803_vm4, %v796_v16 }
 0x5bf   :  { %v1223_v11 = vpop.permute.xlu0 %1222 }
 0x5c0   :  { %4095 = vmatpush3.msra.mxu1 %v1223_v11 }
 0x5c1   :  { %4104 = vmatprep.subr.mxu1 %v4417_v8 }
 0x5c2   :  { %v4334_v14 = vpop.eup %4333 }
 0x5c3   :  { %v642_v15 = vmul.f32 %v4334_v14, %v4330_v2  ;;  %v1388_v45 = vpop.permute.xlu0 %1387 }
 0x5c5   :  { %4062 = vmatmul.mubr.msk.f32.vlgmr.msra.gmra.mrb[0].mxu0 %vm286_vm3, %v642_v15 }
 0x5c6   :  { %4070 = vmatpush3.msk.msra.mxu0 %vm803_vm4, %v796_v16 }
 0x5c7   :  { %4074 = vmatprep.subr.msk.mxu0 %vm803_vm4, %v463_v17  ;;  %v1386_v47 = vpop.permute.xlu0 %1385 }
 0x5cb   :  { %v1466_v51 = vpop.permute.xlu0 %1465 }
 0x657   :  { %v792_v18 = vpop.f32.mrb[14].mxu1 }
 0x658   :  { %v4068_v19 = vpop.f32.mrb[15].mxu1 }
 0x65b   :  { %v1040_v20 = vpop.f32.mrb[16].mxu1 }
 0x65c   :  { %v4083_v21 = vpop.f32.mrb[17].mxu1  ;;  %v1122_v22 = vsel %vm286_vm3, %v1040_v20, -inf }
 0x65d   :  { %1123 = vmax.xlane.f32.xlu1 %v1122_v22 }
 0x65f   :  { %v1118_v23 = vpop.f32.mrb[18].mxu1 }
 0x660   :  { %v4088_v24 = vpop.f32.mrb[19].mxu1  ;;  %v1125_v25 = vsel %vm286_vm3, %v1118_v23, -inf }
 0x661   :  { %1126 = vmax.xlane.f32.xlu1 %v1125_v25 }
 0x698   :  { %v716_v26 = vpop.f32.mrb[0].mxu0 }
 0x699   :  { %v4063_v27 = vpop.f32.mrb[1].mxu0  ;;  %4071 = vmatprep.mubr.msk.f32.mxu0 %vm134_vm2, %v716_v26 }
 0x69a   :  { %4072 = vmatmul.mubr.msk.f32.vlgmr.msra.gmra.mrb[2].mxu0 %vm134_vm2, %v792_v18 }
 0x69b   :  { %4076 = vmatprep.mubr.msk.f32.mxu0 %vm134_vm2, %v4565_v44  ;;  %4075 = vmatpush3.msk.msra.mxu0 %vm803_vm4, %v463_v17 }
 0x69c   :  { %4089 = vmatprep.subr.mxu0 %v4417_v8 }
 0x6a2   :  { %4077 = vmatmul.mubr.msk.f32.vlgmr.msra.gmra.mrb[2].mxu0 %vm134_vm2, %v4567_v46 }
 0x6a3   :  { %4091 = vmatprep.mubr.msk.f32.mxu0 %vm4418_vm1, %v4417_v8 }
 0x6ea   :  { %v1124_v28 = vpop.xlane.xlu1 %1123 }
 0x6eb   :  { %v1128_v29 = vsub.f32 %v1040_v20, %v1124_v28 }
 0x6ed   :  { %v1130_v30 = vmul.f32 1.442695, %v1128_v29 }
 0x6ee   :  { %v1127_v31 = vpop.xlane.xlu1 %1126 }
 0x6ef   :  { %4335 = vpow2.f32 %v1130_v30  ;;  %v1129_v32 = vsub.f32 %v1118_v23, %v1127_v31  ;;  %v1717_v30 = vld [vmem:[%s5009_s3 + $0xc] sm:$0xf] }
 0x6f1   :  { %v1132_v33 = vmul.f32 1.442695, %v1129_v32 }
 0x6f3   :  { %4337 = vpow2.f32 %v1132_v33 }
 0x6f9   :  { %v4336_v34 = vpop.eup %4335 }
 0x6fa   :  { %v1134_v35 = vsel %vm286_vm3, %v4336_v34, 0.0 }
 0x6fb   :  { %1135 = vadd.xlane.f32.xlu1 %v1134_v35 }
 0x6fd   :  { %v4338_v36 = vpop.eup %4337 }
 0x6fe   :  { %v1137_v37 = vsel %vm286_vm3, %v4338_v36, 0.0 }
 0x6ff   :  { %1138 = vadd.xlane.f32.xlu1 %v1137_v37 }
 0x710   :  { %1146 = vrot.lane.b32.xlu1 %v4519_v12, %s4426_s24  ;;  %s4440_s24 = smov 100  }
 0x714   :  { %1463 = vrot.lane.b32.xlu1 %v4522_v13, %s4428_s26 }
 0x718   :  { %1806 = vrot.lane.b32.xlu1 %v4519_v12, %s4429_s9 }
 0x788   :  { %v1136_v38 = vpop.xlane.xlu1 %1135 }
 0x789   :  { %4339 = vrcp.f32 %v1136_v38 }
 0x78c   :  { %v1139_v39 = vpop.xlane.xlu1 %1138 }
 0x78d   :  { %4341 = vrcp.f32 %v1139_v39 }
 0x790   :  { %v1147_v41 = vpop.permute.xlu1 %1146 }
 0x791   :  { %4090 = vmatpush3.msra.mxu0 %v1147_v41 }
 0x792   :  { %4099 = vmatprep.subr.msk.mxu0 %vm803_vm4, %v1298_v40 }
 0x793   :  { %v4340_v42 = vpop.eup %4339 }
 0x794   :  { %v1144_v43 = vmul.f32 %v4340_v42, %v4336_v34  ;;  %v1464_v53 = vpop.permute.xlu1 %1463 }
 0x796   :  { %4092 = vmatmul.mubr.msk.f32.vlgmr.msra.gmra.mrb[4].mxu0 %vm286_vm3, %v1144_v43 }
 0x797   :  { %v4342_v44 = vpop.eup %4341  ;;  %4100 = vmatpush3.msk.msra.mxu0 %vm803_vm4, %v1298_v40 }
 0x798   :  { %v1145_v46 = vmul.f32 %v4342_v44, %v4338_v36  ;;  %4109 = vmatprep.subr.mxu0 %v4417_v8  ;;  %v1807_v2 = vpop.permute.xlu1 %1806 }
 0x79a   :  { %4097 = vmatmul.mubr.msk.f32.vlgmr.msra.gmra.mrb[20].mxu1 %vm286_vm3, %v1145_v46 }
 0x79b   :  { %4105 = vmatpush3.xpose.msk.msra.mxu1 %vm134_vm2, %v1388_v45  ;;  %4106 = vmatprep.mubr.msk.f32.mxu1 %vm4418_vm1, %v4417_v8  ;;  %v2136_v45 = vld [vmem:[%s5009_s3 + $0x10] sm:$0xf] }
 0x79c   :  { %4114 = vmatprep.subr.mxu1 %v4417_v8 }
 0x79e   :  { %4107 = vmatmul.mubr.msk.f32.vlgmr.msra.gmra.mrb[22].mxu1 %vm134_vm2, %v1386_v47 }
 0x79f   :  { %4116 = vmatprep.mubr.msk.f32.mxu1 %vm4418_vm1, %v4417_v8 }
 0x869   :  { %v1218_v48 = vpop.f32.mrb[4].mxu0 }
 0x86a   :  { %v4093_v49 = vpop.f32.mrb[5].mxu0  ;;  %4101 = vmatprep.mubr.msk.f32.mxu0 %vm134_vm2, %v1218_v48 }
 0x86d   :  { %v1294_v50 = vpop.f32.mrb[20].mxu1 }
 0x86e   :  { %v4098_v52 = vpop.f32.mrb[21].mxu1  ;;  %4102 = vmatmul.mubr.msk.f32.vlgmr.msra.gmra.mrb[2].mxu0 %vm134_vm2, %v1294_v50 }
 0x86f   :  { %4110 = vmatpush3.xpose.msk.msra.mxu0 %vm134_vm2, %v1466_v51  ;;  %4111 = vmatprep.mubr.msk.f32.mxu0 %vm4418_vm1, %v4417_v8 }
 0x870   :  { %4119 = vmatprep.subr.mxu0 %v4417_v8 }
 0x871   :  { %v1459_v54 = vpop.f32.mrb[22].mxu1 }
 0x872   :  { %v4108_v55 = vpop.f32.mrb[23].mxu1  ;;  %4112 = vmatmul.mubr.msk.f32.vlgmr.msra.gmra.mrb[6].mxu0 %vm134_vm2, %v1464_v53  ;;  %v1541_v56 = vsel %vm286_vm3, %v1459_v54, -inf }
 0x873   :  { %1542 = vmax.xlane.f32.xlu0 %v1541_v56  ;;  %4121 = vmatprep.mubr.msk.f32.mxu0 %vm4418_vm1, %v4417_v8 }
 0x889   :  { %1565 = vrot.lane.b32.xlu0 %v4519_v12, %s4430_s12 }
 0x88d   :  { %1804 = vrot.lane.b32.xlu0 %v4519_v12, %s4431_s13 }
 0x891   :  { %1882 = vrot.lane.b32.xlu0 %v4522_v13, %s4431_s13 }
 0x900   :  { %v1543_v57 = vpop.xlane.xlu0 %1542 }
 0x901   :  { %v1547_v58 = vsub.f32 %v1459_v54, %v1543_v57 }
 0x903   :  { %v1549_v59 = vmul.f32 1.442695, %v1547_v58 }
 0x904   :  { %v1566_v60 = vpop.permute.xlu0 %1565 }
 0x905   :  { %4343 = vpow2.f32 %v1549_v59  ;;  %4115 = vmatpush3.msra.mxu1 %v1566_v60 }
 0x906   :  { %4129 = vmatprep.subr.mxu1 %v4417_v8 }
 0x908   :  { %v1805_v6 = vpop.permute.xlu0 %1804 }
 0x90c   :  { %v1883_v9 = vpop.permute.xlu0 %1882 }
 0x90f   :  { %v4344_v61 = vpop.eup %4343 }
 0x910   :  { %v1553_v62 = vsel %vm286_vm3, %v4344_v61, 0.0 }
 0x911   :  { %1554 = vadd.xlane.f32.xlu1 %v1553_v62 }
 0x922   :  { %1884 = vrot.lane.b32.xlu1 %v4522_v13, %s4429_s9 }
 0x945   :  { %v1537_v63 = vpop.f32.mrb[6].mxu0 }
 0x946   :  { %v4113_v0 = vpop.f32.mrb[7].mxu0  ;;  %v1544_v1 = vsel %vm286_vm3, %v1537_v63, -inf }
 0x947   :  { %1545 = vmax.xlane.f32.xlu1 %v1544_v1 }
 0x99e   :  { %v1555_v3 = vpop.xlane.xlu1 %1554 }
 0x99f   :  { %4345 = vrcp.f32 %v1555_v3 }
 0x9a2   :  { %v1885_v7 = vpop.permute.xlu1 %1884 }
 0x9a9   :  { %v4346_v4 = vpop.eup %4345 }
 0x9aa   :  { %v1563_v5 = vmul.f32 %v4346_v4, %v4344_v61 }
 0x9ac   :  { %4117 = vmatmul.mubr.msk.f32.vlgmr.msra.gmra.mrb[24].mxu1 %vm286_vm3, %v1563_v5 }
 0x9ad   :  { %4130 = vmatpush3.xpose.msk.msra.mxu1 %vm134_vm2, %v1807_v2  ;;  %4131 = vmatprep.mubr.msk.f32.mxu1 %vm4418_vm1, %v4417_v8 }
 0x9ae   :  { %4134 = vmatprep.subr.mxu1 %v4417_v8 }
 0x9b0   :  { %4132 = vmatmul.mubr.msk.f32.vlgmr.msra.gmra.mrb[26].mxu1 %vm134_vm2, %v1805_v6 }
 0x9b1   :  { %4135 = vmatpush3.xpose.msk.msra.mxu1 %vm134_vm2, %v1885_v7  ;;  %4136 = vmatprep.mubr.msk.f32.mxu1 %vm4418_vm1, %v4417_v8 }
 0x9b2   :  { %4144 = vmatprep.subr.mxu1 %v4417_v8 }
 0x9b4   :  { %4137 = vmatmul.mubr.msk.f32.vlgmr.msra.gmra.mrb[28].mxu1 %vm134_vm2, %v1883_v9 }
 0x9b5   :  { %4146 = vmatprep.mubr.msk.f32.mxu1 %vm4418_vm1, %v4417_v8 }
 0x9d4   :  { %v1546_v10 = vpop.xlane.xlu1 %1545 }
 0x9d5   :  { %v1548_v11 = vsub.f32 %v1537_v63, %v1546_v10 }
 0x9d7   :  { %v1551_v14 = vmul.f32 1.442695, %v1548_v11 }
 0x9d9   :  { %4347 = vpow2.f32 %v1551_v14 }
 0x9e3   :  { %v4348_v15 = vpop.eup %4347 }
 0x9e4   :  { %v1556_v16 = vsel %vm286_vm3, %v4348_v15, 0.0 }
 0x9e5   :  { %1557 = vadd.xlane.f32.xlu0 %v1556_v16 }
 0x9fb   :  { %1641 = vrot.lane.b32.xlu0 %v4522_v13, %s4430_s12 }
 0x9ff   :  { %2060 = vrot.lane.b32.xlu0 %v4522_v13, %s4432_s14 }
 0xa03   :  { %2225 = vrot.lane.b32.xlu0 %v4519_v12, %s4433_s15 }
 0xa07   :  { %2223 = vrot.lane.b32.xlu0 %v4519_v12, %s4434_s16 }
 0xa0b   :  { %2303 = vrot.lane.b32.xlu0 %v4522_v13, %s4433_s15 }
 0xa72   :  { %v1558_v17 = vpop.xlane.xlu0 %1557 }
 0xa73   :  { %4349 = vrcp.f32 %v1558_v17 }
 0xa76   :  { %v1642_v18 = vpop.permute.xlu0 %1641 }
 0xa77   :  { %4120 = vmatpush3.msra.mxu0 %v1642_v18 }
 0xa78   :  { %4124 = vmatprep.subr.msk.mxu0 %vm803_vm4, %v1717_v30 }
 0xa7a   :  { %v2061_v19 = vpop.permute.xlu0 %2060 }
 0xa7b   :  { %4145 = vmatpush3.msra.mxu1 %v2061_v19 }
 0xa7c   :  { %4154 = vmatprep.subr.mxu1 %v4417_v8 }
 0xa7d   :  { %v4350_v20 = vpop.eup %4349 }
 0xa7e   :  { %v1564_v21 = vmul.f32 %v4350_v20, %v4348_v15  ;;  %v2226_v50 = vpop.permute.xlu0 %2225 }
 0xa7f   :  { %v1637_v22 = vpop.f32.mrb[24].mxu1 }
 0xa80   :  { %v4118_v23 = vpop.f32.mrb[25].mxu1  ;;  %4122 = vmatmul.mubr.msk.f32.vlgmr.msra.gmra.mrb[8].mxu0 %vm286_vm3, %v1564_v21 }
 0xa81   :  { %4126 = vmatprep.mubr.msk.f32.mxu0 %vm134_vm2, %v1637_v22  ;;  %4125 = vmatpush3.msk.msra.mxu0 %vm803_vm4, %v1717_v30 }
 0xa82   :  { %4139 = vmatprep.subr.mxu0 %v4417_v8  ;;  %v2224_v52 = vpop.permute.xlu0 %2223 }
 0xa83   :  { %v1878_v24 = vpop.f32.mrb[26].mxu1 }
 0xa84   :  { %v4133_v25 = vpop.f32.mrb[27].mxu1  ;;  %v1960_v26 = vsel %vm286_vm3, %v1878_v24, -inf }
 0xa85   :  { %1961 = vmax.xlane.f32.xlu1 %v1960_v26 }
 0xa86   :  { %v2304_v56 = vpop.permute.xlu0 %2303 }
 0xa87   :  { %v1956_v27 = vpop.f32.mrb[28].mxu1 }
 0xa88   :  { %v4138_v28 = vpop.f32.mrb[29].mxu1  ;;  %v1963_v29 = vsel %vm286_vm3, %v1956_v27, -inf }
 0xa89   :  { %1964 = vmax.xlane.f32.xlu1 %v1963_v29 }
 0xb12   :  { %v1962_v31 = vpop.xlane.xlu1 %1961 }
 0xb13   :  { %v1966_v32 = vsub.f32 %v1878_v24, %v1962_v31 }
 0xb15   :  { %v1968_v33 = vmul.f32 1.442695, %v1966_v32 }
 0xb16   :  { %v1965_v34 = vpop.xlane.xlu1 %1964 }
 0xb17   :  { %4351 = vpow2.f32 %v1968_v33  ;;  %v1967_v35 = vsub.f32 %v1956_v27, %v1965_v34 }
 0xb19   :  { %v1970_v36 = vmul.f32 1.442695, %v1967_v35  ;;  %v2555_v35 = vld [vmem:[%s5009_s3 + $0x14] sm:$0xf] }
 0xb1b   :  { %4353 = vpow2.f32 %v1970_v36 }
 0xb21   :  { %v4352_v37 = vpop.eup %4351 }
 0xb22   :  { %v1972_v38 = vsel %vm286_vm3, %v4352_v37, 0.0 }
 0xb23   :  { %1973 = vadd.xlane.f32.xlu1 %v1972_v38 }
 0xb25   :  { %v4354_v39 = vpop.eup %4353 }
 0xb26   :  { %v1975_v40 = vsel %vm286_vm3, %v4354_v39, 0.0 }
 0xb27   :  { %1976 = vadd.xlane.f32.xlu1 %v1975_v40 }
 0xb38   :  { %1984 = vrot.lane.b32.xlu1 %v4519_v12, %s4432_s14 }
 0xb3c   :  { %2301 = vrot.lane.b32.xlu1 %v4522_v13, %s4434_s16 }
 0xb40   :  { %2644 = vrot.lane.b32.xlu1 %v4519_v12, %s4435_s18 }
 0xb53   :  { %v1713_v41 = vpop.f32.mrb[8].mxu0 }
 0xb54   :  { %v4123_v42 = vpop.f32.mrb[9].mxu0  ;;  %4127 = vmatmul.mubr.msk.f32.vlgmr.msra.gmra.mrb[2].mxu0 %vm134_vm2, %v1713_v41 }
 0xb55   :  { %4141 = vmatprep.mubr.msk.f32.mxu0 %vm4418_vm1, %v4417_v8 }
 0xbb0   :  { %v1974_v43 = vpop.xlane.xlu1 %1973 }
 0xbb1   :  { %4355 = vrcp.f32 %v1974_v43 }
 0xbb4   :  { %v1977_v44 = vpop.xlane.xlu1 %1976 }
 0xbb5   :  { %4357 = vrcp.f32 %v1977_v44 }
 0xbb8   :  { %v1985_v46 = vpop.permute.xlu1 %1984 }
 0xbb9   :  { %4140 = vmatpush3.msra.mxu0 %v1985_v46 }
 0xbba   :  { %4149 = vmatprep.subr.msk.mxu0 %vm803_vm4, %v2136_v45 }
 0xbbb   :  { %v4356_v47 = vpop.eup %4355 }
 0xbbc   :  { %v1982_v48 = vmul.f32 %v4356_v47, %v4352_v37  ;;  %v2302_v58 = vpop.permute.xlu1 %2301 }
 0xbbe   :  { %4142 = vmatmul.mubr.msk.f32.vlgmr.msra.gmra.mrb[10].mxu0 %vm286_vm3, %v1982_v48 }
 0xbbf   :  { %v4358_v49 = vpop.eup %4357  ;;  %4150 = vmatpush3.msk.msra.mxu0 %vm803_vm4, %v2136_v45 }
 0xbc0   :  { %v1983_v51 = vmul.f32 %v4358_v49, %v4354_v39  ;;  %4159 = vmatprep.subr.mxu0 %v4417_v8  ;;  %v2645_v7 = vpop.permute.xlu1 %2644 }
 0xbc2   :  { %4147 = vmatmul.mubr.msk.f32.vlgmr.msra.gmra.mrb[30].mxu1 %vm286_vm3, %v1983_v51 }
 0xbc3   :  { %4155 = vmatpush3.xpose.msk.msra.mxu1 %vm134_vm2, %v2226_v50  ;;  %4156 = vmatprep.mubr.msk.f32.mxu1 %vm4418_vm1, %v4417_v8  ;;  %v2974_v50 = vld [vmem:[%s5009_s3 + $0x18] sm:$0xf] }
 0xbc4   :  { %4164 = vmatprep.subr.mxu1 %v4417_v8 }
 0xbc6   :  { %4157 = vmatmul.mubr.msk.f32.vlgmr.msra.gmra.mrb[32].mxu1 %vm134_vm2, %v2224_v52 }
 0xbc7   :  { %4166 = vmatprep.mubr.msk.f32.mxu1 %vm4418_vm1, %v4417_v8 }
 0xc91   :  { %v2056_v53 = vpop.f32.mrb[10].mxu0 }
 0xc92   :  { %v4143_v54 = vpop.f32.mrb[11].mxu0  ;;  %4151 = vmatprep.mubr.msk.f32.mxu0 %vm134_vm2, %v2056_v53 }
 0xc95   :  { %v2132_v55 = vpop.f32.mrb[30].mxu1 }
 0xc96   :  { %v4148_v57 = vpop.f32.mrb[31].mxu1  ;;  %4152 = vmatmul.mubr.msk.f32.vlgmr.msra.gmra.mrb[2].mxu0 %vm134_vm2, %v2132_v55 }
 0xc97   :  { %4160 = vmatpush3.xpose.msk.msra.mxu0 %vm134_vm2, %v2304_v56  ;;  %4161 = vmatprep.mubr.msk.f32.mxu0 %vm4418_vm1, %v4417_v8 }
 0xc98   :  { %4169 = vmatprep.subr.mxu0 %v4417_v8 }
 0xc99   :  { %v2297_v59 = vpop.f32.mrb[32].mxu1 }
 0xc9a   :  { %v4158_v60 = vpop.f32.mrb[33].mxu1  ;;  %4162 = vmatmul.mubr.msk.f32.vlgmr.msra.gmra.mrb[12].mxu0 %vm134_vm2, %v2302_v58  ;;  %v2379_v61 = vsel %vm286_vm3, %v2297_v59, -inf }
 0xc9b   :  { %2380 = vmax.xlane.f32.xlu0 %v2379_v61  ;;  %4171 = vmatprep.mubr.msk.f32.mxu0 %vm4418_vm1, %v4417_v8 }
 0xcb1   :  { %2403 = vrot.lane.b32.xlu0 %v4519_v12, %s4436_s20 }
 0xcb5   :  { %2642 = vrot.lane.b32.xlu0 %v4519_v12, %s4437_s21 }
 0xcb9   :  { %2720 = vrot.lane.b32.xlu0 %v4522_v13, %s4437_s21  ;;  %s4442_s21 = smov [#allocation2]  }
 0xd28   :  { %v2381_v62 = vpop.xlane.xlu0 %2380 }
 0xd29   :  { %v2385_v63 = vsub.f32 %v2297_v59, %v2381_v62 }
 0xd2b   :  { %v2387_v0 = vmul.f32 1.442695, %v2385_v63 }
 0xd2c   :  { %v2404_v1 = vpop.permute.xlu0 %2403 }
 0xd2d   :  { %4359 = vpow2.f32 %v2387_v0  ;;  %4165 = vmatpush3.msra.mxu1 %v2404_v1 }
 0xd2e   :  { %4179 = vmatprep.subr.mxu1 %v4417_v8 }
 0xd30   :  { %v2643_v14 = vpop.permute.xlu0 %2642 }
 0xd34   :  { %v2721_v16 = vpop.permute.xlu0 %2720 }
 0xd37   :  { %v4360_v2 = vpop.eup %4359 }
 0xd38   :  { %v2391_v3 = vsel %vm286_vm3, %v4360_v2, 0.0 }
 0xd39   :  { %2392 = vadd.xlane.f32.xlu1 %v2391_v3 }
 0xd4a   :  { %2722 = vrot.lane.b32.xlu1 %v4522_v13, %s4435_s18 }
 0xd6d   :  { %v2375_v4 = vpop.f32.mrb[12].mxu0 }
 0xd6e   :  { %v4163_v5 = vpop.f32.mrb[13].mxu0  ;;  %v2382_v6 = vsel %vm286_vm3, %v2375_v4, -inf }
 0xd6f   :  { %2383 = vmax.xlane.f32.xlu1 %v2382_v6 }
 0xdc6   :  { %v2393_v9 = vpop.xlane.xlu1 %2392 }
 0xdc7   :  { %4361 = vrcp.f32 %v2393_v9 }
 0xdca   :  { %v2723_v15 = vpop.permute.xlu1 %2722 }
 0xdd1   :  { %v4362_v10 = vpop.eup %4361 }
 0xdd2   :  { %v2401_v11 = vmul.f32 %v4362_v10, %v4360_v2 }
 0xdd4   :  { %4167 = vmatmul.mubr.msk.f32.vlgmr.msra.gmra.mrb[34].mxu1 %vm286_vm3, %v2401_v11 }
 0xdd5   :  { %4180 = vmatpush3.xpose.msk.msra.mxu1 %vm134_vm2, %v2645_v7  ;;  %4181 = vmatprep.mubr.msk.f32.mxu1 %vm4418_vm1, %v4417_v8 }
 0xdd6   :  { %4184 = vmatprep.subr.mxu1 %v4417_v8 }
 0xdd8   :  { %4182 = vmatmul.mubr.msk.f32.vlgmr.msra.gmra.mrb[36].mxu1 %vm134_vm2, %v2643_v14 }
 0xdd9   :  { %4185 = vmatpush3.xpose.msk.msra.mxu1 %vm134_vm2, %v2723_v15  ;;  %4186 = vmatprep.mubr.msk.f32.mxu1 %vm4418_vm1, %v4417_v8 }
 0xdda   :  { %4194 = vmatprep.subr.mxu1 %v4417_v8 }
 0xddc   :  { %4187 = vmatmul.mubr.msk.f32.vlgmr.msra.gmra.mrb[38].mxu1 %vm134_vm2, %v2721_v16 }
 0xddd   :  { %4196 = vmatprep.mubr.msk.f32.mxu1 %vm4418_vm1, %v4417_v8 }
 0xdfc   :  { %v2384_v17 = vpop.xlane.xlu1 %2383 }
 0xdfd   :  { %v2386_v18 = vsub.f32 %v2375_v4, %v2384_v17 }
 0xdff   :  { %v2389_v19 = vmul.f32 1.442695, %v2386_v18 }
 0xe01   :  { %4363 = vpow2.f32 %v2389_v19 }
 0xe0b   :  { %v4364_v20 = vpop.eup %4363 }
 0xe0c   :  { %v2394_v21 = vsel %vm286_vm3, %v4364_v20, 0.0 }
 0xe0d   :  { %2395 = vadd.xlane.f32.xlu0 %v2394_v21 }
 0xe23   :  { %2479 = vrot.lane.b32.xlu0 %v4522_v13, %s4436_s20 }
 0xe27   :  { %2898 = vrot.lane.b32.xlu0 %v4522_v13, %s4438_s22 }
 0xe2b   :  { %3063 = vrot.lane.b32.xlu0 %v4519_v12, %s4439_s23 }
 0xe2f   :  { %3141 = vrot.lane.b32.xlu0 %v4522_v13, %s4439_s23 }
 0xe33   :  { %3061 = vrot.lane.b32.xlu0 %v4519_v12, %s4440_s24 }
 0xe9a   :  { %v2396_v22 = vpop.xlane.xlu0 %2395 }
 0xe9b   :  { %4365 = vrcp.f32 %v2396_v22 }
 0xe9e   :  { %v2480_v23 = vpop.permute.xlu0 %2479 }
 0xe9f   :  { %4170 = vmatpush3.msra.mxu0 %v2480_v23  ;;  %v3393_v23 = vld [vmem:[%s5009_s3 + $0x1c] sm:$0xf] }
 0xea0   :  { %4174 = vmatprep.subr.msk.mxu0 %vm803_vm4, %v2555_v35 }
 0xea2   :  { %v2899_v24 = vpop.permute.xlu0 %2898 }
 0xea3   :  { %4195 = vmatpush3.msra.mxu1 %v2899_v24 }
 0xea4   :  { %4204 = vmatprep.subr.mxu1 %v4417_v8 }
 0xea5   :  { %v4366_v25 = vpop.eup %4365 }
 0xea6   :  { %v2402_v26 = vmul.f32 %v4366_v25, %v4364_v20  ;;  %v3064_v52 = vpop.permute.xlu0 %3063 }
 0xea7   :  { %v2475_v27 = vpop.f32.mrb[34].mxu1 }
 0xea8   :  { %v4168_v28 = vpop.f32.mrb[35].mxu1  ;;  %4172 = vmatmul.mubr.msk.f32.vlgmr.msra.gmra.mrb[14].mxu0 %vm286_vm3, %v2402_v26 }
 0xea9   :  { %4176 = vmatprep.mubr.msk.f32.mxu0 %vm134_vm2, %v2475_v27  ;;  %4175 = vmatpush3.msk.msra.mxu0 %vm803_vm4, %v2555_v35  ;;  %v4391_v35 = vld [vmem:[%s5006_s0 + $0x8] sm:$0xff] }
 0xeaa   :  { %4189 = vmatprep.subr.mxu0 %v4417_v8  ;;  %v3142_v56 = vpop.permute.xlu0 %3141 }
 0xeab   :  { %v2716_v29 = vpop.f32.mrb[36].mxu1 }
 0xeac   :  { %v4183_v30 = vpop.f32.mrb[37].mxu1  ;;  %v2798_v31 = vsel %vm286_vm3, %v2716_v29, -inf }
 0xead   :  { %2799 = vmax.xlane.f32.xlu1 %v2798_v31  ;;  %v3878_v30 = vld [vmem:[%s5013_s7] ss:$0 sm:$0xff] }
 0xeae   :  { %v3062_v58 = vpop.permute.xlu0 %3061 }
 0xeaf   :  { %v2794_v32 = vpop.f32.mrb[38].mxu1 }
 0xeb0   :  { %v4188_v33 = vpop.f32.mrb[39].mxu1  ;;  %v2801_v34 = vsel %vm286_vm3, %v2794_v32, -inf }
 0xeb1   :  { %2802 = vmax.xlane.f32.xlu1 %v2801_v34 }
 0xf3a   :  { %v2800_v36 = vpop.xlane.xlu1 %2799 }
 0xf3b   :  { %v2804_v37 = vsub.f32 %v2716_v29, %v2800_v36 }
 0xf3d   :  { %v2806_v38 = vmul.f32 1.442695, %v2804_v37  ;;  %v4392_v37 = vld [vmem:[%s5006_s0] sm:$0xff] }
 0xf3e   :  { %v2803_v39 = vpop.xlane.xlu1 %2802 }
 0xf3f   :  { %4367 = vpow2.f32 %v2806_v38  ;;  %v2805_v40 = vsub.f32 %v2794_v32, %v2803_v39 }
 0xf41   :  { %v2808_v41 = vmul.f32 1.442695, %v2805_v40 }
 0xf43   :  { %4369 = vpow2.f32 %v2808_v41 }
 0xf49   :  { %v4368_v42 = vpop.eup %4367 }
 0xf4a   :  { %v2810_v43 = vsel %vm286_vm3, %v4368_v42, 0.0 }
 0xf4b   :  { %2811 = vadd.xlane.f32.xlu1 %v2810_v43 }
 0xf4d   :  { %v4370_v44 = vpop.eup %4369 }
 0xf4e   :  { %v2813_v45 = vsel %vm286_vm3, %v4370_v44, 0.0 }
 0xf4f   :  { %2814 = vadd.xlane.f32.xlu1 %v2813_v45 }
 0xf60   :  { %2822 = vrot.lane.b32.xlu1 %v4519_v12, %s4438_s22  ;;  %s3792_s22 = sshll.u32 %s4442_s21, 4  ;;  %s3793_s22 = int_to_ptr.vmem [resolvable:$true] %s3792_s22 }
 0xf61   :  { %s4393_s23 = scalar_lea.vmem %s3793_s22, 256  ;;  %p4398_p1 = scmp.lt.s32.totalorder %s3793_s22, %s3793_s22 }
 0xf62   :  { %p4394_p0 = scmp.ne.s32.totalorder %s3793_s22, %s4393_s23  ;;  %p4399_p2 = scmp.lt.s32.totalorder %s4393_s23, %s4393_s23 }
 0xf64   :  { %3139 = vrot.lane.b32.xlu1 %v4522_v13, %s4440_s24  ;;  %p4400_p3 = por %p4399_p2, %p4398_p1 }
 0xf66   :  { %p4401_p4 = pnand %p4400_p3, %p4394_p0 }
 0xf7b   :  { %v2551_v46 = vpop.f32.mrb[14].mxu0 }
 0xf7c   :  { %v4173_v47 = vpop.f32.mrb[15].mxu0  ;;  %4177 = vmatmul.mubr.msk.f32.vlgmr.msra.gmra.mrb[2].mxu0 %vm134_vm2, %v2551_v46 }
 0xf7d   :  { %4191 = vmatprep.mubr.msk.f32.mxu0 %vm4418_vm1, %v4417_v8 }
 0xfd8   :  { %v2812_v48 = vpop.xlane.xlu1 %2811 }
 0xfd9   :  { %4371 = vrcp.f32 %v2812_v48 }
 0xfdc   :  { %v2815_v49 = vpop.xlane.xlu1 %2814 }
 0xfdd   :  { %4373 = vrcp.f32 %v2815_v49 }
 0xfe0   :  { %v2823_v51 = vpop.permute.xlu1 %2822 }
 0xfe1   :  { %4190 = vmatpush3.msra.mxu0 %v2823_v51  ;;  %v3528_v51 = vld [vmem:[%s5010_s4 + $0x8] sm:$0xff] }
 0xfe2   :  { %4199 = vmatprep.subr.msk.mxu0 %vm803_vm4, %v2974_v50 }
 0xfe3   :  { %v4372_v53 = vpop.eup %4371 }
 0xfe4   :  { %v2820_v54 = vmul.f32 %v4372_v53, %v4368_v42  ;;  %v3140_v63 = vpop.permute.xlu1 %3139 }
 0xfe6   :  { %4192 = vmatmul.mubr.msk.f32.vlgmr.msra.gmra.mrb[16].mxu0 %vm286_vm3, %v2820_v54  ;;  %v3527_v54 = vld [vmem:[%s5010_s4] sm:$0xff] }
 0xfe7   :  { %v4374_v55 = vpop.eup %4373  ;;  %4200 = vmatpush3.msk.msra.mxu0 %vm803_vm4, %v2974_v50 }
 0xfe8   :  { %v2821_v57 = vmul.f32 %v4374_v55, %v4370_v44  ;;  %4209 = vmatprep.subr.mxu0 %v4417_v8  ;;  %v3529_v55 = vld [vmem:[%s5010_s4 + $0x10] sm:$0xff] }
 0xfea   :  { %4197 = vmatmul.mubr.msk.f32.vlgmr.msra.gmra.mrb[40].mxu1 %vm286_vm3, %v2821_v57  ;;  %v3532_v57 = vld [vmem:[%s5010_s4 + $0x28] sm:$0xff] }
 0xfeb   :  { %4205 = vmatpush3.xpose.msk.msra.mxu1 %vm134_vm2, %v3064_v52  ;;  %4206 = vmatprep.mubr.msk.f32.mxu1 %vm4418_vm1, %v4417_v8  ;;  %v3530_v52 = vld [vmem:[%s5010_s4 + $0x18] sm:$0xff] }
 0xfec   :  { %4214 = vmatprep.subr.mxu1 %v4417_v8  ;;  %v4237_v53 = vpack.c.bf16 %v3530_v52, %v3528_v51  ;;  %v3880_v52 = vld [vmem:[%s5013_s7 + $0x3] ss:$0 sm:$0xff] }
 0xfee   :  { %4207 = vmatmul.mubr.msk.f32.vlgmr.msra.gmra.mrb[42].mxu1 %vm134_vm2, %v3062_v58  ;;  %v3534_v58 = vld [vmem:[%s5010_s4 + $0x38] sm:$0xff] }
 0xfef   :  { %4216 = vmatprep.mubr.msk.f32.mxu1 %vm4418_vm1, %v4417_v8 }
0x10b9   :  { %v2894_v59 = vpop.f32.mrb[16].mxu0 }
0x10ba   :  { %v4193_v60 = vpop.f32.mrb[17].mxu0  ;;  %4201 = vmatprep.mubr.msk.f32.mxu0 %vm134_vm2, %v2894_v59  ;;  %v3531_v59 = vld [vmem:[%s5010_s4 + $0x20] sm:$0xff] }
0x10bb   :  { %v4241_v60 = vpack.c.bf16 %v3534_v58, %v3532_v57  ;;  %v3664_v58 = vld [vmem:[%s5012_s6 + $0xf0] sm:$0xff] }
0x10bd   :  { %v2970_v61 = vpop.f32.mrb[40].mxu1 }
0x10be   :  { %v4198_v62 = vpop.f32.mrb[41].mxu1  ;;  %4202 = vmatmul.mubr.msk.f32.vlgmr.msra.gmra.mrb[2].mxu0 %vm134_vm2, %v2970_v61  ;;  %v3533_v61 = vld [vmem:[%s5010_s4 + $0x30] sm:$0xff] }
0x10bf   :  { %4210 = vmatpush3.xpose.msk.msra.mxu0 %vm134_vm2, %v3142_v56  ;;  %4211 = vmatprep.mubr.msk.f32.mxu0 %vm4418_vm1, %v4417_v8  ;;  %v4239_v56 = vpack.c.bf16 %v3529_v55, %v3527_v54  ;;  %v4243_v62 = vpack.c.bf16 %v3533_v61, %v3531_v59  ;;  %v3649_v61 = vld [vmem:[%s5012_s6 + $0x78] sm:$0xff] }
0x10c0   :  { %4219 = vmatprep.subr.mxu0 %v4417_v8 }
0x10c1   :  { %v3135_v0 = vpop.f32.mrb[42].mxu1 }
0x10c2   :  { %v4208_v1 = vpop.f32.mrb[43].mxu1  ;;  %4212 = vmatmul.mubr.msk.f32.vlgmr.msra.gmra.mrb[18].mxu0 %vm134_vm2, %v3140_v63  ;;  %v3217_v2 = vsel %vm286_vm3, %v3135_v0, -inf  ;;  %v3650_v63 = vld [vmem:[%s5012_s6 + $0x80] sm:$0xff] }
0x10c3   :  { %3218 = vmax.xlane.f32.xlu0 %v3217_v2  ;;  %4221 = vmatprep.mubr.msk.f32.mxu0 %vm4418_vm1, %v4417_v8  ;;  %v3634_v1 = vld [vmem:[%s5012_s6] sm:$0xff] }
0x1150   :  { %v3219_v3 = vpop.xlane.xlu0 %3218 }
0x1151   :  { %v3223_v4 = vsub.f32 %v3135_v0, %v3219_v3  ;;  %v3651_v0 = vld [vmem:[%s5012_s6 + $0x88] sm:$0xff] }
0x1152   :  { %v4245_v2 = vpack.c.bf16 %v3651_v0, %v3650_v63  ;;  %v3635_v3 = vld [vmem:[%s5012_s6 + $0x8] sm:$0xff]  ;;  %v3537_v63 = vlaneseq }
0x1153   :  { %v3225_v5 = vmul.f32 1.442695, %v3223_v4  ;;  %v3652_v4 = vld [vmem:[%s5012_s6 + $0x90] sm:$0xff] }
0x1154   :  { %v3538_v0 = vshrl.u32 %v3537_v63, 7 }
0x1155   :  { %4375 = vpow2.f32 %v3225_v5  ;;  %v3653_v5 = vld [vmem:[%s5012_s6 + $0x98] sm:$0xff] }
0x115f   :  { %v4376_v6 = vpop.eup %4375 }
0x1160   :  { %v3229_v7 = vsel %vm286_vm3, %v4376_v6, 0.0 }
0x1161   :  { %3230 = vadd.xlane.f32.xlu0 %v3229_v7  ;;  %v4249_v7 = vpack.c.bf16 %v3653_v5, %v3652_v4 }
0x1195   :  { %v3213_v9 = vpop.f32.mrb[18].mxu0 }
0x1196   :  { %v4213_v10 = vpop.f32.mrb[19].mxu0  ;;  %v3220_v11 = vsel %vm286_vm3, %v3213_v9, -inf }
0x1197   :  { %3221 = vmax.xlane.f32.xlu1 %v3220_v11  ;;  %v3637_v10 = vld [vmem:[%s5012_s6 + $0x18] sm:$0xff]  ;;  %v3654_v11 = vld [vmem:[%s5012_s6 + $0xa0] sm:$0xff] }
0x11a8   :  { %3241 = vrot.lane.b32.xlu1 %v4519_v12, %s4441_s29 }
0x11ee   :  { %v3231_v14 = vpop.xlane.xlu0 %3230 }
0x11ef   :  { %4377 = vrcp.f32 %v3231_v14  ;;  %v3655_v14 = vld [vmem:[%s5012_s6 + $0xa8] sm:$0xff] }
0x11f9   :  { %v4378_v16 = vpop.eup %4377 }
0x11fa   :  { %v3239_v19 = vmul.f32 %v4378_v16, %v4376_v6  ;;  %v4247_v6 = vpack.c.bf16 %v3635_v3, %v3634_v1  ;;  %v4253_v16 = vpack.c.bf16 %v3655_v14, %v3654_v11  ;;  %v3539_v1 = vsub.s32 0, %v3538_v0 }
0x11fb   :  { %v3543_v3 = vsub.s32 1, %v3538_v0 }
0x1224   :  { %v3222_v15 = vpop.xlane.xlu1 %3221 }
0x1225   :  { %v3224_v17 = vsub.f32 %v3213_v9, %v3222_v15  ;;  %v3636_v9 = vld [vmem:[%s5012_s6 + $0x10] sm:$0xff] }
0x1226   :  { %v4251_v15 = vpack.c.bf16 %v3637_v10, %v3636_v9 }
0x1227   :  { %v3227_v18 = vmul.f32 1.442695, %v3224_v17  ;;  %v3638_v17 = vld [vmem:[%s5012_s6 + $0x20] sm:$0xff] }
0x1228   :  { %v3242_v20 = vpop.permute.xlu1 %3241 }
0x1229   :  { %4379 = vpow2.f32 %v3227_v18  ;;  %4215 = vmatpush3.msra.mxu1 %v3242_v20  ;;  %v3639_v18 = vld [vmem:[%s5012_s6 + $0x28] sm:$0xff]  ;;  %v3657_v20 = vld [vmem:[%s5012_s6 + $0xb8] sm:$0xff] }
0x122a   :  { %4217 = vmatmul.mubr.msk.f32.vlgmr.msra.gmra.mrb[44].mxu1 %vm286_vm3, %v3239_v19  ;;  %4238 = vmatprep.subr.bf16.mxu1 %v4237_v53  ;;  %v3656_v19 = vld [vmem:[%s5012_s6 + $0xb0] sm:$0xff] }
0x122b   :  { %3617 = vmatprep.mubr.f32.mxu1 %v4417_v8  ;;  %4240 = vmatpush1.bf16.msra.mxu1 %v4239_v56 }
0x122c   :  { %4242 = vmatprep.subr.bf16.mxu1 %v4241_v60  ;;  %v3648_v60 = vld [vmem:[%s5012_s6 + $0x70] sm:$0xff] }
0x122f   :  { %4244 = vmatpush1.bf16.msra.mxu1 %v4243_v62  ;;  %v4275_v62 = vpack.c.bf16 %v3649_v61, %v3648_v60 }
0x1233   :  { %v4380_v21 = vpop.eup %4379 }
0x1234   :  { %v3232_v22 = vsel %vm286_vm3, %v4380_v21, 0.0 }
0x1235   :  { %3233 = vadd.xlane.f32.xlu0 %v3232_v22  ;;  %v4257_v22 = vpack.c.bf16 %v3657_v20, %v3656_v19 }
0x124b   :  { %3317 = vrot.lane.b32.xlu0 %v4522_v13, %s4441_s29 }
0x12c2   :  { %v3234_v12 = vpop.xlane.xlu0 %3233 }
0x12c3   :  { %4381 = vrcp.f32 %v3234_v12  ;;  %v3640_v12 = vld [vmem:[%s5012_s6 + $0x30] sm:$0xff] }
0x12c6   :  { %v3318_v24 = vpop.permute.xlu0 %3317 }
0x12c7   :  { %4220 = vmatpush3.msra.mxu0 %v3318_v24  ;;  %v3658_v24 = vld [vmem:[%s5012_s6 + $0xc0] sm:$0xff] }
0x12c8   :  { %4224 = vmatprep.subr.msk.mxu0 %vm803_vm4, %v3393_v23 }
0x12cd   :  { %v4382_v25 = vpop.eup %4381 }
0x12ce   :  { %v3240_v26 = vmul.f32 %v4382_v25, %v4380_v21  ;;  %v4255_v21 = vpack.c.bf16 %v3639_v18, %v3638_v17  ;;  %v3659_v25 = vld [vmem:[%s5012_s6 + $0xc8] sm:$0xff] }
0x12d0   :  { %4222 = vmatmul.mubr.msk.f32.vlgmr.msra.gmra.mrb[20].mxu0 %vm286_vm3, %v3240_v26 }
0x12d1   :  { %4225 = vmatpush3.msk.msra.mxu0 %vm803_vm4, %v3393_v23  ;;  %v3641_v23 = vld [vmem:[%s5012_s6 + $0x38] sm:$0xff] }
0x12d2   :  { %4246 = vmatprep.subr.bf16.mxu0 %v4245_v2  ;;  %v4259_v26 = vpack.c.bf16 %v3641_v23, %v3640_v12  ;;  %v3535_v2 = vld [vmem:[%s5011_s5] sm:$0x3] }
0x12d3   :  { %v3540_v4 = vrot.slane %v3535_v2, %v3539_v1  ;;  %v3544_v5 = vrot.slane %v3535_v2, %v3543_v3 }
0x12fd   :  { %v3313_v27 = vpop.f32.mrb[44].mxu1 }
0x12fe   :  { %v4218_v28 = vpop.f32.mrb[45].mxu1  ;;  %4226 = vmatprep.mubr.msk.f32.mxu0 %vm134_vm2, %v3313_v27  ;;  %v4261_v27 = vpack.c.bf16 %v3659_v25, %v3658_v24 }
0x12ff   :  { %v3642_v28 = vld [vmem:[%s5012_s6 + $0x40] sm:$0xff] }
0x13a3   :  { %v3389_v13 = vpop.f32.mrb[20].mxu0 }
0x13a4   :  { %v4223_v29 = vpop.f32.mrb[21].mxu0  ;;  %4227 = vmatmul.mubr.msk.f32.vlgmr.msra.gmra.mrb[2].mxu0 %vm134_vm2, %v3389_v13  ;;  %v3643_v13 = vld [vmem:[%s5012_s6 + $0x48] sm:$0xff] }
0x13a5   :  { %4248 = vmatpush3.bf16.msra.mxu0 %v4247_v6  ;;  %v3660_v29 = vld [vmem:[%s5012_s6 + $0xd0] sm:$0xff] }
0x13a6   :  { %4250 = vmatprep.subr.bf16.mxu0 %v4249_v7 }
0x13a9   :  { %4252 = vmatpush3.bf16.msra.mxu0 %v4251_v15 }
0x13aa   :  { %4254 = vmatprep.subr.bf16.mxu0 %v4253_v16 }
0x13ad   :  { %4256 = vmatpush3.bf16.msra.mxu0 %v4255_v21 }
0x13ae   :  { %4258 = vmatprep.subr.bf16.mxu0 %v4257_v22  ;;  %v3883_v22 = vld [vmem:[%s5013_s7 + $0x1] ss:$0 sm:$0xff] }
0x13b1   :  { %4260 = vmatpush3.bf16.msra.mxu0 %v4259_v26 }
0x13b2   :  { %4262 = vmatprep.subr.bf16.mxu0 %v4261_v27 }
0x1477   :  { %v4228_v31 = vpop.f32.mrb[2].mxu0 }
0x1478   :  { %v3485_v32 = vadd.f32 %v4228_v31, %v3878_v30  ;;  %v3469_v33 = vpop.f32.mrb[3].mxu0  ;;  %v4263_v31 = vpack.c.bf16 %v3643_v13, %v3642_v28 }
0x1479   :  { %v3484_v34 = vadd.f32 %v3878_v30, %v3469_v33  ;;  %v3661_v30 = vld [vmem:[%s5012_s6 + $0xd8] sm:$0xff]  ;;  %v3644_v33 = vld [vmem:[%s5012_s6 + $0x50] sm:$0xff] }
0x147a   :  { %v3487_v36 = vadd.f32 %v4391_v35, %v3485_v32  ;;  %v4265_v32 = vpack.c.bf16 %v3661_v30, %v3660_v29  ;;  %v3662_v35 = vld [vmem:[%s5012_s6 + $0xe0] sm:$0xff]  ;;  %4264 = vmatpush3.bf16.msra.mxu0 %v4263_v31 }
0x147b   :  { %v3486_v38 = vadd.f32 %v4392_v37, %v3484_v34  ;;  %v3645_v34 = vld [vmem:[%s5012_s6 + $0x58] sm:$0xff] }
0x147c   :  { %v3491_v39 = vsel %vm49_vm0, %v3487_v36, 0.0  ;;  %v4267_v37 = vpack.c.bf16 %v3645_v34, %v3644_v33  ;;  %4266 = vmatprep.subr.bf16.mxu0 %v4265_v32 }
0x147d   :  { %3492 = vadd.xlane.f32.xlu0 %v3491_v39  ;;  %v3488_v40 = vsel %vm49_vm0, %v3486_v38, 0.0 }
0x147e   :  { %3489 = vadd.xlane.f32.xlu1 %v3488_v40  ;;  %4268 = vmatpush3.bf16.msra.mxu0 %v4267_v37 }
0x150a   :  { %v3493_v41 = vpop.xlane.xlu0 %3492 }
0x150b   :  { %v3496_v42 = vmul.f32 0.03125, %v3493_v41  ;;  %v3490_v43 = vpop.xlane.xlu1 %3489 }
0x150c   :  { %v3495_v44 = vmul.f32 0.03125, %v3490_v43 }
0x150d   :  { %v4835_v45 = vsub.f32 %v3487_v36, %v3496_v42  ;;  %v3663_v36 = vld [vmem:[%s5012_s6 + $0xe8] sm:$0xff] }
0x150e   :  { %v4837_v46 = vsub.f32 %v3486_v38, %v3495_v44  ;;  %v4269_v38 = vpack.c.bf16 %v3663_v36, %v3662_v35 }
0x150f   :  { %v3500_v47 = vmul.f32 %v4835_v45, %v4835_v45 }
0x1510   :  { %v3499_v48 = vmul.f32 %v4837_v46, %v4837_v46  ;;  %4270 = vmatprep.subr.bf16.mxu0 %v4269_v38 }
0x1511   :  { %v3504_v49 = vsel %vm49_vm0, %v3500_v47, 0.0 }
0x1512   :  { %3505 = vadd.xlane.f32.xlu0 %v3504_v49  ;;  %v3501_v50 = vsel %vm49_vm0, %v3499_v48, 0.0  ;;  %v3879_v49 = vld [vmem:[%s5013_s7 + $0x2] ss:$0 sm:$0xff] }
0x1513   :  { %3502 = vadd.xlane.f32.xlu1 %v3501_v50 }
0x159f   :  { %v3506_v39 = vpop.xlane.xlu0 %3505 }
0x15a0   :  { %v3508_v40 = vmul.f32 0.03125, %v3506_v39  ;;  %v3503_v41 = vpop.xlane.xlu1 %3502 }
0x15a1   :  { %v3507_v42 = vmul.f32 0.03125, %v3503_v41 }
0x15a2   :  { %v3510_v43 = vadd.f32 1e-06, %v3508_v40 }
0x15a3   :  { %v3509_v44 = vadd.f32 1e-06, %v3507_v42 }
0x15a4   :  { %4383 = vrsqrt.f32 %v3510_v43 }
0x15a5   :  { %4385 = vrsqrt.f32 %v3509_v44 }
0x15ae   :  { %v4384_v47 = vpop.eup %4383 }
0x15af   :  { %v4386_v48 = vpop.eup %4385  ;;  %v3514_v51 = vmul.f32 %v4384_v47, %v4835_v45  ;;  %v3647_v45 = vld [vmem:[%s5012_s6 + $0x68] sm:$0xff] }
0x15b0   :  { %v3513_v50 = vmul.f32 %v4386_v48, %v4837_v46  ;;  %v3646_v46 = vld [vmem:[%s5012_s6 + $0x60] sm:$0xff] }
0x15b1   :  { %v3520_v55 = vmul.f32 %v3879_v49, %v3514_v51  ;;  %v4271_v57 = vpack.c.bf16 %v3647_v45, %v3646_v46  ;;  %v3884_v51 = vld [vmem:[%s5013_s7 + $0x4] ss:$0 sm:$0xff] }
0x15b2   :  { %v3519_v53 = vmul.f32 %v3879_v49, %v3513_v50 }
0x15b3   :  { %v3526_v56 = vadd.f32 %v3880_v52, %v3520_v55  ;;  %4272 = vmatpush3.bf16.msra.mxu0 %v4271_v57 }
0x15b4   :  { %v3525_v54 = vadd.f32 %v3880_v52, %v3519_v53  ;;  %v3885_v53 = vld [vmem:[%s5013_s7 + $0x5] ss:$0 sm:$0xff] }
0x15b6   :  { %3881 = vmatmul.mubr.msk.f32.vlgmr.msra.gmra.mrb[46].mxu1 %vm49_vm0, %v3525_v54 }
0x15b7   :  { %3623 = vmatprep.mubr.f32.mxu1 %v4417_v8  ;;  %v3665_v8 = vld [vmem:[%s5012_s6 + $0xf8] sm:$0xff] }
0x15b8   :  { %v4273_v59 = vpack.c.bf16 %v3665_v8, %v3664_v58 }
0x15ba   :  { %3882 = vmatmul.mubr.msk.f32.gmra.mrb[48].mxu1 %vm49_vm0, %v3526_v56  ;;  %4274 = vmatprep.subr.bf16.mxu0 %v4273_v59 }
0x15bb   :  { %4276 = vmatpush3.bf16.msra.mxu0 %v4275_v62 }
0x1689   :  { %v3619_v6 = vpop.f32.mrb[46].mxu1 }
0x168a   :  { %v3620_v7 = vadd.f32 %v3619_v6, %v3540_v4  ;;  %v3621_v9 = vpop.f32.mrb[47].mxu1 }
0x168b   :  { %v3622_v10 = vadd.f32 %v3621_v9, %v3544_v5 }
0x168c   :  { %v3630_v15 = vmax.f32 %v3620_v7, 0.0 }
0x168d   :  { %v3631_v11 = vmax.f32 %v3622_v10, 0.0  ;;  %v3625_v14 = vpop.f32.mrb[48].mxu1 }
0x168e   :  { %v3626_v16 = vadd.f32 %v3625_v14, %v3540_v4  ;;  %v3627_v17 = vpop.f32.mrb[49].mxu1 }
0x168f   :  { %v3628_v18 = vadd.f32 %v3627_v17, %v3544_v5  ;;  %3734 = vmatprep.mubr.f32.mxu0 %v3631_v11 }
0x1690   :  { %3735 = vmatmul.mubr.f32.vlgmr.msra.gmra.mrb[22].mxu0 %v3630_v15  ;;  %v3632_v20 = vmax.f32 %v3626_v16, 0.0 }
0x1691   :  { %v3633_v19 = vmax.f32 %v3628_v18, 0.0 }
0x1693   :  { %3739 = vmatprep.mubr.f32.mxu0 %v3633_v19 }
0x1694   :  { %3740 = vmatmul.mubr.f32.gmra.mrb[24].mxu0 %v3632_v20 }
0x1763   :  { %v4012_v21 = vpop.f32.mrb[22].mxu0 }
0x1764   :  { %v4013_v12 = vpop.f32.mrb[23].mxu0 }
0x1765   :  { %v4014_v23 = vadd.f32 %v4013_v12, %v4012_v21 }
0x1767   :  { %v3737_v24 = vadd.f32 %v4014_v23, %v3883_v22  ;;  %v4015_v25 = vpop.f32.mrb[24].mxu0 }
0x1768   :  { %v4016_v26 = vpop.f32.mrb[25].mxu0 }
0x1769   :  { %v4017_v27 = vadd.f32 %v4016_v26, %v4015_v25  ;;  %v3745_v28 = vadd.f32 %v3737_v24, %v3525_v54 }
0x176b   :  { %v3742_v13 = vadd.f32 %v4017_v27, %v3883_v22  ;;  %v3747_v29 = vsel %vm49_vm0, %v3745_v28, 0.0 }
0x176c   :  { %3748 = vadd.xlane.f32.xlu1 %v3747_v29 }
0x176d   :  { %v3746_v30 = vadd.f32 %v3742_v13, %v3526_v56 }
0x176f   :  { %v3750_v31 = vsel %vm49_vm0, %v3746_v30, 0.0 }
0x1770   :  { %3751 = vadd.xlane.f32.xlu0 %v3750_v31 }
0x17f9   :  { %v3749_v32 = vpop.xlane.xlu1 %3748 }
0x17fa   :  { %v3753_v33 = vmul.f32 0.03125, %v3749_v32 }
0x17fc   :  { %v3755_v34 = vsub.f32 %v3745_v28, %v3753_v33 }
0x17fd   :  { %v3752_v35 = vpop.xlane.xlu0 %3751 }
0x17fe   :  { %v3754_v36 = vmul.f32 0.03125, %v3752_v35  ;;  %v3757_v37 = vmul.f32 %v3755_v34, %v3755_v34 }
0x1800   :  { %v3756_v38 = vsub.f32 %v3746_v30, %v3754_v36  ;;  %v3759_v39 = vsel %vm49_vm0, %v3757_v37, 0.0 }
0x1801   :  { %3760 = vadd.xlane.f32.xlu1 %v3759_v39 }
0x1802   :  { %v3758_v40 = vmul.f32 %v3756_v38, %v3756_v38 }
0x1804   :  { %v3762_v41 = vsel %vm49_vm0, %v3758_v40, 0.0 }
0x1805   :  { %3763 = vadd.xlane.f32.xlu0 %v3762_v41 }
0x188e   :  { %v3761_v42 = vpop.xlane.xlu1 %3760 }
0x188f   :  { %v3765_v43 = vmul.f32 0.03125, %v3761_v42 }
0x1891   :  { %v3767_v44 = vadd.f32 1e-06, %v3765_v43 }
0x1892   :  { %v3764_v47 = vpop.xlane.xlu0 %3763 }
0x1893   :  { %4387 = vrsqrt.f32 %v3767_v44  ;;  %v3766_v48 = vmul.f32 0.03125, %v3764_v47 }
0x1895   :  { %v3768_v49 = vadd.f32 1e-06, %v3766_v48 }
0x1897   :  { %4389 = vrsqrt.f32 %v3768_v49 }
0x189d   :  { %v4388_v50 = vpop.eup %4387 }
0x189e   :  { %v3771_v52 = vmul.f32 %v4388_v50, %v3755_v34 }
0x18a0   :  { %v3777_v54 = vmul.f32 %v3884_v51, %v3771_v52 }
0x18a1   :  { %v4390_v55 = vpop.eup %4389 }
0x18a2   :  { %v3772_v56 = vmul.f32 %v4390_v55, %v3756_v38  ;;  %v3783_v46 = vadd.f32 %v3885_v53, %v3777_v54 }
0x18a4   :  { %v3778_v45 = vmul.f32 %v3884_v51, %v3772_v56  ;;  %3785 = vst.msk [vmem:[#allocation2] sm:$0xff] %vm49_vm0, %v3783_v46 }
0x18a6   :  { %v3784_v57 = vadd.f32 %v3885_v53, %v3778_v45 }
0x18a8   :  { %3786 = vst.msk [vmem:[#allocation2 + $0x8] sm:$0xff] %vm49_vm0, %v3784_v57 }
0x18a9   :  { %4404 = shalt.err (!%p4401_p4)
}
0x18aa   :  { %s4405_s25 = scalar_lea.hbm %s5014_s8, 256 }
0x18ab   :  { %p4406_p5 = scmp.ne.s32.totalorder %s5014_s8, %s4405_s25  ;;  %p4409_p6 = scmp.lt.u32.totalorder %s4405_s25, %s5014_s8 }
0x18ad   :  { %p4411_p7 = pnand %p4409_p6, %p4406_p5 }
0x18af   :  { %4414 = shalt.err (!%p4411_p7)
}
0x18b0   :  { %s4443_s30 = smov 128   ;;  %s4444_s9 = smov 8  }
0x18b1   :  { %3798 = dma.vmem_to_hbm [thread:$0]  %s3793_s22, 256, %s5014_s8, [#allocation3], %s4443_s30, %s4443_s30, %s4444_s9  }
0x18b2   :  { %4415 = dma.done.wait [#allocation3], 256  }
0x18b3   :  { %4416 = vsyncadd [#allocation3], 4294967040 }
0x18b4   :  { %3802 = vsyncpa [#allocation3], 1 }

</bundles_post_ra>
